<compile_context>
chip_gen: v7x
topology: tpu7x:2x2x1
jax: 0.10.0
libtpu: 0.0.40
codegen_flags: <defaults>
</compile_context>

<pallas_src>
import functools
import math

import jax
import jax.numpy as jnp
from jax.experimental import pallas as pl
from jax.experimental.pallas import tpu as pltpu

LN_EPS = 1e-5      # torch.nn.LayerNorm default
NEG_BIG = -1e30    # additive causal-mask value (acts as -inf after softmax)


# ----------------------------- small helpers --------------------------------

def _round_up(n, m):
    return ((n + m - 1) // m) * m


def _vmem_limit_bytes():
    # Generation-aware scoped-VMEM limit: ~3/4 of physical, capped at 100 MiB.
    try:
        cap = pltpu.get_tpu_info().vmem_capacity_bytes
    except Exception:
        cap = 64 * 1024 * 1024
    return max(32 * 1024 * 1024, min(int(cap * 3 // 4), 100 * 1024 * 1024))


def _layernorm(h, w, b):
    # h: (T, C) f32; w, b: (1, C) f32
    mu = jnp.mean(h, axis=-1, keepdims=True)
    var = jnp.mean((h - mu) ** 2, axis=-1, keepdims=True)
    return (h - mu) * jax.lax.rsqrt(var + LN_EPS) * w + b


def _new_gelu(x):
    c = math.sqrt(2.0 / math.pi)
    return 0.5 * x * (1.0 + jnp.tanh(c * (x + 0.044715 * x * x * x)))


def _mm(x_f32, w_bf16):
    # (T, IN) f32 x (IN, OUT) bf16 -> (T, OUT) f32: bf16 operands, f32 MXU accum.
    return jax.lax.dot_general(
        x_f32.astype(jnp.bfloat16), w_bf16,
        dimension_numbers=(((1,), (0,)), ((), ())),
        preferred_element_type=jnp.float32)


# ------------------------------- fused kernel --------------------------------

def gpt_kernel(n_head,
               x_ref, wte_ref, wteb_ref, pos_ref, mask_ref,
               ln1w_ref, ln1b_ref, wq_ref, wk_ref, wv_ref,
               bq_ref, bk_ref, bv_ref, wpr_ref, bpr_ref,
               ln2w_ref, ln2b_ref, wfc_ref, bfc_ref, wmp_ref, bmp_ref,
               lnfw_ref, lnfb_ref, wlm_ref,
               o_ref, res_ref):
    """Grid = (batch, layer).  One invocation = one transformer Block for one
    batch element; embedding fused at l==0, final LN + lm_head at l==last."""
    l = pl.program_id(1)

    # ---- embedding: tok_emb = x @ Wte + b ; + pos_emb (dropout = identity) ----
    @pl.when(l == 0)
    def _():
        tok = _mm(x_ref[0], wte_ref[...])                     # (T, C) f32
        res_ref[...] = tok + wteb_ref[...] + pos_ref[...]

    x = res_ref[...]                                          # (T, C) f32
    T, C = x.shape
    hd = C // n_head
    scale = 1.0 / math.sqrt(hd)

    # ---- attention branch: x + attn(ln_1(x)) ---------------------------------
    h = _layernorm(x, ln1w_ref[...], ln1b_ref[...])
    # Head-batched QKV projection (weights pre-split per head on the host):
    # one leading-dim broadcast, no lane slices / concats / transposes.
    hb = jnp.broadcast_to(h.astype(jnp.bfloat16)[None], (n_head, T, C))
    q = jnp.einsum('htc,hcd->htd', hb, wq_ref[...],
                   preferred_element_type=jnp.float32) + bq_ref[...]
    k = jnp.einsum('htc,hcd->htd', hb, wk_ref[...],
                   preferred_element_type=jnp.float32) + bk_ref[...]
    v = jnp.einsum('htc,hcd->htd', hb, wv_ref[...],
                   preferred_element_type=jnp.float32) + bv_ref[...]

    att = jnp.einsum('hqd,hkd->hqk', q.astype(jnp.bfloat16), k.astype(jnp.bfloat16),
                     preferred_element_type=jnp.float32) * scale
    att = att + mask_ref[...][None]                           # additive causal mask
    att = att - jnp.max(att, axis=-1, keepdims=True)
    e = jnp.exp(att)
    p = e / jnp.sum(e, axis=-1, keepdims=True)                # exact softmax
    y = jnp.einsum('hqk,hkd->hqd', p.astype(jnp.bfloat16), v.astype(jnp.bfloat16),
                   preferred_element_type=jnp.float32)        # (H, T, hd)

    # c_proj with the head-merge folded in: sum_h y[h] @ Wproj[h]  (no concat).
    yp = jnp.einsum('htd,hdc->htc', y.astype(jnp.bfloat16), wpr_ref[...],
                    preferred_element_type=jnp.float32)       # (H, T, C)
    y_proj = yp[0]
    for hh in range(1, n_head):                               # static unroll
        y_proj = y_proj + yp[hh]
    x = x + y_proj + bpr_ref[...]

    # ---- MLP branch: x + mlp(ln_2(x)) -----------------------------------------
    h2 = _layernorm(x, ln2w_ref[...], ln2b_ref[...])
    ff = _new_gelu(_mm(h2, wfc_ref[...]) + bfc_ref[...])      # (T, 4C)
    x = x + _mm(ff, wmp_ref[...]) + bmp_ref[...]

    res_ref[...] = x

    # ---- final LayerNorm + lm_head (only on the last layer iteration) ---------
    @pl.when(l == pl.num_programs(1) - 1)
    def _():
        hf = _layernorm(x, lnfw_ref[...], lnfb_ref[...])
        o_ref[0] = _mm(hf, wlm_ref[...])                      # (T, out_pad)


# ------------------------------- wrapper --------------------------------------

def gpt_forward(params, x, *, n_head, output_dim):
    B, T, Din = x.shape
    in_pad, C = params['wte_w'].shape
    n_layer = params['wfc'].shape[0]
    out_pad = params['lm_head_w'].shape[1]
    H = n_head
    hd = C // H

    # Zero-pad the input feature dim to a lane-dense contraction (exact math).
    x_pad = jnp.pad(x, ((0, 0), (0, 0), (0, in_pad - Din)))
    pos_emb = params['wpe'][:T]                               # (T, C)

    # Additive causal mask built once on the host; resident in VMEM.
    row = jnp.arange(T, dtype=jnp.int32)[:, None]
    col = jnp.arange(T, dtype=jnp.int32)[None, :]
    mask_bias = jnp.where(col <= row, 0.0, NEG_BIG).astype(jnp.float32)

    def resident(shape):                   # whole array, fetched once
        nd = len(shape)
        return pl.BlockSpec(tuple(shape), lambda b, l, _n=nd: (0,) * _n)

    def per_layer(tail):                   # stacked (n_layer, *tail); squeeze layer dim
        nz = len(tail)
        return pl.BlockSpec((None,) + tuple(tail),
                            lambda b, l, _n=nz: (l,) + (0,) * _n)

    in_specs = [
        pl.BlockSpec((1, T, in_pad), lambda b, l: (b, 0, 0)),   # x (padded)
        resident((in_pad, C)),                                  # wte_w
        resident((1, C)),                                       # wte_b
        resident((T, C)),                                       # pos_emb
        resident((T, T)),                                       # causal mask
        per_layer((1, C)), per_layer((1, C)),                   # ln1_w, ln1_b
        per_layer((H, C, hd)), per_layer((H, C, hd)), per_layer((H, C, hd)),  # wq,wk,wv
        per_layer((H, 1, hd)), per_layer((H, 1, hd)), per_layer((H, 1, hd)),  # bq,bk,bv
        per_layer((H, hd, C)),                                  # wproj (per head)
        per_layer((1, C)),                                      # bproj
        per_layer((1, C)), per_layer((1, C)),                   # ln2_w, ln2_b
        per_layer((C, 4 * C)), per_layer((1, 4 * C)),           # wfc, bfc
        per_layer((4 * C, C)), per_layer((1, C)),               # wmp, bmp
        resident((1, C)), resident((1, C)),                     # lnf_w, lnf_b
        resident((C, out_pad)),                                 # lm_head_w
    ]

    logits_pad = pl.pallas_call(
        functools.partial(gpt_kernel, n_head),
        out_shape=jax.ShapeDtypeStruct((B, T, out_pad), jnp.float32),
        grid=(B, n_layer),
        in_specs=in_specs,
        out_specs=pl.BlockSpec((1, T, out_pad), lambda b, l: (b, 0, 0)),
        scratch_shapes=[pltpu.VMEM((T, C), jnp.float32)],       # residual stream
        compiler_params=pltpu.CompilerParams(
            dimension_semantics=("parallel", "arbitrary"),
            vmem_limit_bytes=_vmem_limit_bytes()),
    )(x_pad, params['wte_w'], params['wte_b'], pos_emb, mask_bias,
      params['ln1_w'], params['ln1_b'],
      params['wq'], params['wk'], params['wv'],
      params['bq'], params['bk'], params['bv'],
      params['wproj'], params['bproj'],
      params['ln2_w'], params['ln2_b'],
      params['wfc'], params['bfc'], params['wmp'], params['bmp'],
      params['lnf_w'], params['lnf_b'], params['lm_head_w'])

    return logits_pad[:, :, :output_dim]


# --------------------------- parameter init -----------------------------------

def init_params(key, *, input_dim, output_dim, block_size, n_embd, n_head,
                n_layer, in_pad, out_pad):
    # Mirrors GPT._init_weights: Linear/Embedding weights ~ N(0, 0.02), biases 0,
    # LayerNorm weight=1 / bias=0, c_proj.weight std = 0.02 / sqrt(2*n_layer).
    # Weights are stored PRE-TRANSPOSED to (IN, OUT), attention weights split
    # per head on the leading dims, stacked over layers and cast to bf16
    # (matmul operands); biases / LN params stay f32.  wte / lm_head are
    # zero-padded to lane-dense shapes (exact math).
    C = n_embd
    hd = C // n_head
    k_wte, k_wpe, k_lm, k_q, k_k, k_v, k_pr, k_fc, k_mp = jax.random.split(key, 9)

    def nrm(k, shape, std=0.02):
        return jax.random.normal(k, shape, jnp.float32) * std

    proj_std = 0.02 / math.sqrt(2 * n_layer)

    wte = jnp.zeros((in_pad, C), jnp.float32).at[:input_dim].set(
        nrm(k_wte, (input_dim, C)))
    lm = jnp.zeros((C, out_pad), jnp.float32).at[:, :output_dim].set(
        nrm(k_lm, (C, output_dim)))

    return {
        'wte_w': wte.astype(jnp.bfloat16),
        'wte_b': jnp.zeros((1, C), jnp.float32),
        'wpe': nrm(k_wpe, (block_size, C)),
        'lnf_w': jnp.ones((1, C), jnp.float32),
        'lnf_b': jnp.zeros((1, C), jnp.float32),
        'lm_head_w': lm.astype(jnp.bfloat16),
        # stacked per-layer parameters
        'ln1_w': jnp.ones((n_layer, 1, C), jnp.float32),
        'ln1_b': jnp.zeros((n_layer, 1, C), jnp.float32),
        'wq': nrm(k_q, (n_layer, n_head, C, hd)).astype(jnp.bfloat16),
        'wk': nrm(k_k, (n_layer, n_head, C, hd)).astype(jnp.bfloat16),
        'wv': nrm(k_v, (n_layer, n_head, C, hd)).astype(jnp.bfloat16),
        'bq': jnp.zeros((n_layer, n_head, 1, hd), jnp.float32),
        'bk': jnp.zeros((n_layer, n_head, 1, hd), jnp.float32),
        'bv': jnp.zeros((n_layer, n_head, 1, hd), jnp.float32),
        'wproj': nrm(k_pr, (n_layer, n_head, hd, C), std=proj_std).astype(jnp.bfloat16),
        'bproj': jnp.zeros((n_layer, 1, C), jnp.float32),
        'ln2_w': jnp.ones((n_layer, 1, C), jnp.float32),
        'ln2_b': jnp.zeros((n_layer, 1, C), jnp.float32),
        'wfc': nrm(k_fc, (n_layer, C, 4 * C)).astype(jnp.bfloat16),
        'bfc': jnp.zeros((n_layer, 1, 4 * C), jnp.float32),
        'wmp': nrm(k_mp, (n_layer, 4 * C, C), std=proj_std).astype(jnp.bfloat16),
        'bmp': jnp.zeros((n_layer, 1, C), jnp.float32),
    }


# --------------------------------- main ----------------------------------------

if __name__ == "__main__":
    # Small config; n_embd = 128 so the embedding dim is lane-dense, T = 8 so
    # the sequence fills the sublane dim exactly.
    B, T = 2, 8
    input_dim, output_dim = 10, 12
    n_embd, n_head, n_layer, block_size = 128, 4, 2, 16
    in_pad = _round_up(input_dim, 128)
    out_pad = _round_up(output_dim, 128)

    key = jax.random.PRNGKey(0)
    pkey, xkey = jax.random.split(key)
    params = init_params(pkey, input_dim=input_dim, output_dim=output_dim,
                         block_size=block_size, n_embd=n_embd, n_head=n_head,
                         n_layer=n_layer, in_pad=in_pad, out_pad=out_pad)
    x = jax.random.normal(xkey, (B, T, input_dim), jnp.float32)

    logits = gpt_forward(params, x, n_head=n_head, output_dim=output_dim)
    logits = jax.block_until_ready(logits)
    assert logits.shape == (B, T, output_dim)
    assert bool(jnp.all(jnp.isfinite(logits)))
    print("KERNEL_OK")
</pallas_src>

<mosaic_0001>
module attributes {stable_mosaic.version = 11 : i64} {
  func.func @gpt_kernel(%arg0: i32, %arg1: i32, %arg2: memref<1x8x128xf32, #tpu.memory_space<vmem>>, %arg3: memref<128x128xbf16, #tpu.memory_space<vmem>>, %arg4: memref<1x128xf32, #tpu.memory_space<vmem>>, %arg5: memref<8x128xf32, #tpu.memory_space<vmem>>, %arg6: memref<8x8xf32, #tpu.memory_space<vmem>>, %arg7: memref<1x1x128xf32, #tpu.memory_space<vmem>>, %arg8: memref<1x1x128xf32, #tpu.memory_space<vmem>>, %arg9: memref<1x4x128x32xbf16, #tpu.memory_space<vmem>>, %arg10: memref<1x4x128x32xbf16, #tpu.memory_space<vmem>>, %arg11: memref<1x4x128x32xbf16, #tpu.memory_space<vmem>>, %arg12: memref<1x4x1x32xf32, #tpu.memory_space<vmem>>, %arg13: memref<1x4x1x32xf32, #tpu.memory_space<vmem>>, %arg14: memref<1x4x1x32xf32, #tpu.memory_space<vmem>>, %arg15: memref<1x4x32x128xbf16, #tpu.memory_space<vmem>>, %arg16: memref<1x1x128xf32, #tpu.memory_space<vmem>>, %arg17: memref<1x1x128xf32, #tpu.memory_space<vmem>>, %arg18: memref<1x1x128xf32, #tpu.memory_space<vmem>>, %arg19: memref<1x128x512xbf16, #tpu.memory_space<vmem>>, %arg20: memref<1x1x512xf32, #tpu.memory_space<vmem>>, %arg21: memref<1x512x128xbf16, #tpu.memory_space<vmem>>, %arg22: memref<1x1x128xf32, #tpu.memory_space<vmem>>, %arg23: memref<1x128xf32, #tpu.memory_space<vmem>>, %arg24: memref<1x128xf32, #tpu.memory_space<vmem>>, %arg25: memref<128x128xbf16, #tpu.memory_space<vmem>>, %arg26: memref<1x8x128xf32, #tpu.memory_space<vmem>>, %arg27: memref<8x128xf32, #tpu.memory_space<vmem>>) attributes {dimension_semantics = [#tpu.dimension_semantics<parallel>, #tpu.dimension_semantics<arbitrary>], iteration_bounds = array<i64: 2, 2>, scalar_prefetch = 0 : i64, scratch_operands = 1 : i64, tpu.core_type = #tpu.core_type<tc>, window_params = [{transform_indices = @transform_0, window_bounds = array<i64: 1, 8, 128>}, {pipeline_mode = #tpu.pipeline_mode<synchronous>, transform_indices = @transform_1, window_bounds = array<i64: 128, 128>}, {pipeline_mode = #tpu.pipeline_mode<synchronous>, transform_indices = @transform_2, window_bounds = array<i64: 1, 128>}, {pipeline_mode = #tpu.pipeline_mode<synchronous>, transform_indices = @transform_3, window_bounds = array<i64: 8, 128>}, {pipeline_mode = #tpu.pipeline_mode<synchronous>, transform_indices = @transform_4, window_bounds = array<i64: 8, 8>}, {transform_indices = @transform_5, window_bounds = array<i64: 1, 1, 128>}, {transform_indices = @transform_6, window_bounds = array<i64: 1, 1, 128>}, {transform_indices = @transform_7, window_bounds = array<i64: 1, 4, 128, 32>}, {transform_indices = @transform_8, window_bounds = array<i64: 1, 4, 128, 32>}, {transform_indices = @transform_9, window_bounds = array<i64: 1, 4, 128, 32>}, {transform_indices = @transform_10, window_bounds = array<i64: 1, 4, 1, 32>}, {transform_indices = @transform_11, window_bounds = array<i64: 1, 4, 1, 32>}, {transform_indices = @transform_12, window_bounds = array<i64: 1, 4, 1, 32>}, {transform_indices = @transform_13, window_bounds = array<i64: 1, 4, 32, 128>}, {transform_indices = @transform_14, window_bounds = array<i64: 1, 1, 128>}, {transform_indices = @transform_15, window_bounds = array<i64: 1, 1, 128>}, {transform_indices = @transform_16, window_bounds = array<i64: 1, 1, 128>}, {transform_indices = @transform_17, window_bounds = array<i64: 1, 128, 512>}, {transform_indices = @transform_18, window_bounds = array<i64: 1, 1, 512>}, {transform_indices = @transform_19, window_bounds = array<i64: 1, 512, 128>}, {transform_indices = @transform_20, window_bounds = array<i64: 1, 1, 128>}, {pipeline_mode = #tpu.pipeline_mode<synchronous>, transform_indices = @transform_21, window_bounds = array<i64: 1, 128>}, {pipeline_mode = #tpu.pipeline_mode<synchronous>, transform_indices = @transform_22, window_bounds = array<i64: 1, 128>}, {pipeline_mode = #tpu.pipeline_mode<synchronous>, transform_indices = @transform_23, window_bounds = array<i64: 128, 128>}, {transform_indices = @transform_24, window_bounds = array<i64: 1, 8, 128>}]} {
    %c0_i32 = arith.constant 0 : i32
    %0 = arith.cmpi eq, %arg1, %c0_i32 : i32
    %1 = arith.extui %0 : i1 to i32
    %c0_i32_0 = arith.constant 0 : i32
    %2 = arith.cmpi ne, %1, %c0_i32_0 : i32
    scf.if %2 {
      %c0_86 = arith.constant 0 : index
      %c0_87 = arith.constant 0 : index
      %c0_88 = arith.constant 0 : index
      %156 = vector.load %arg2[%c0_86, %c0_87, %c0_88] : memref<1x8x128xf32, #tpu.memory_space<vmem>>, vector<1x8x128xf32>
      %157 = vector.shape_cast %156 : vector<1x8x128xf32> to vector<8x128xf32>
      %c0_89 = arith.constant 0 : index
      %c0_90 = arith.constant 0 : index
      %158 = vector.load %arg3[%c0_89, %c0_90] : memref<128x128xbf16, #tpu.memory_space<vmem>>, vector<128x128xbf16>
      %159 = arith.truncf %157 : vector<8x128xf32> to vector<8x128xbf16>
      %cst_91 = arith.constant dense<0.000000e+00> : vector<8x128xf32>
      %160 = tpu.matmul %159, %158, %cst_91 {dimension_numbers = #tpu.dot_dimension_numbers<[1], [0], [0], [1], [0, 0, 1, 1], [], []>} : vector<8x128xbf16>, vector<128x128xbf16>, vector<8x128xf32> -> vector<8x128xf32>
      %c0_92 = arith.constant 0 : index
      %c0_93 = arith.constant 0 : index
      %161 = vector.load %arg4[%c0_92, %c0_93] : memref<1x128xf32, #tpu.memory_space<vmem>>, vector<1x128xf32>
      %162 = vector.broadcast %161 : vector<1x128xf32> to vector<8x128xf32>
      %163 = arith.addf %160, %162 : vector<8x128xf32>
      %c0_94 = arith.constant 0 : index
      %c0_95 = arith.constant 0 : index
      %164 = vector.load %arg5[%c0_94, %c0_95] : memref<8x128xf32, #tpu.memory_space<vmem>>, vector<8x128xf32>
      %165 = arith.addf %163, %164 : vector<8x128xf32>
      %c0_96 = arith.constant 0 : index
      %c0_97 = arith.constant 0 : index
      %166 = vector.load %arg27[%c0_96, %c0_97] : memref<8x128xf32, #tpu.memory_space<vmem>>, vector<8x128xf32>
      tpu.vector_store %arg27[%c0_96, %c0_97], %165 {strides = array<i32>} : memref<8x128xf32, #tpu.memory_space<vmem>>, vector<8x128xf32>,
    } else {
    }
    %c0 = arith.constant 0 : index
    %c0_1 = arith.constant 0 : index
    %3 = vector.load %arg27[%c0, %c0_1] : memref<8x128xf32, #tpu.memory_space<vmem>>, vector<8x128xf32>
    %c0_2 = arith.constant 0 : index
    %c0_3 = arith.constant 0 : index
    %c0_4 = arith.constant 0 : index
    %4 = vector.load %arg7[%c0_2, %c0_3, %c0_4] : memref<1x1x128xf32, #tpu.memory_space<vmem>>, vector<1x1x128xf32>
    %5 = vector.shape_cast %4 : vector<1x1x128xf32> to vector<1x128xf32>
    %c0_5 = arith.constant 0 : index
    %c0_6 = arith.constant 0 : index
    %c0_7 = arith.constant 0 : index
    %6 = vector.load %arg8[%c0_5, %c0_6, %c0_7] : memref<1x1x128xf32, #tpu.memory_space<vmem>>, vector<1x1x128xf32>
    %7 = vector.shape_cast %6 : vector<1x1x128xf32> to vector<1x128xf32>
    %cst = arith.constant dense<0.000000e+00> : vector<8xf32>
    %8 = vector.multi_reduction <add>, %3, %cst [1] : vector<8x128xf32> to vector<8xf32>
    %9 = vector.shape_cast %8 : vector<8xf32> to vector<8x1xf32>
    %cst_8 = arith.constant 1.280000e+02 : f32
    %10 = vector.broadcast %cst_8 : f32 to vector<8x1xf32>
    %11 = arith.divf %9, %10 : vector<8x1xf32>
    %12 = vector.broadcast %11 : vector<8x1xf32> to vector<8x128xf32>
    %13 = arith.subf %3, %12 : vector<8x128xf32>
    %14 = arith.mulf %13, %13 : vector<8x128xf32>
    %cst_9 = arith.constant dense<0.000000e+00> : vector<8xf32>
    %15 = vector.multi_reduction <add>, %14, %cst_9 [1] : vector<8x128xf32> to vector<8xf32>
    %16 = vector.shape_cast %15 : vector<8xf32> to vector<8x1xf32>
    %cst_10 = arith.constant 1.280000e+02 : f32
    %17 = vector.broadcast %cst_10 : f32 to vector<8x1xf32>
    %18 = arith.divf %16, %17 : vector<8x1xf32>
    %19 = vector.broadcast %11 : vector<8x1xf32> to vector<8x128xf32>
    %20 = arith.subf %3, %19 : vector<8x128xf32>
    %cst_11 = arith.constant 9.99999974E-6 : f32
    %21 = vector.broadcast %cst_11 : f32 to vector<8x1xf32>
    %22 = arith.addf %18, %21 : vector<8x1xf32>
    %23 = math.rsqrt %22 : vector<8x1xf32>
    %24 = vector.broadcast %23 : vector<8x1xf32> to vector<8x128xf32>
    %25 = arith.mulf %20, %24 : vector<8x128xf32>
    %26 = vector.broadcast %5 : vector<1x128xf32> to vector<8x128xf32>
    %27 = arith.mulf %25, %26 : vector<8x128xf32>
    %28 = vector.broadcast %7 : vector<1x128xf32> to vector<8x128xf32>
    %29 = arith.addf %27, %28 : vector<8x128xf32>
    %30 = arith.truncf %29 : vector<8x128xf32> to vector<8x128xbf16>
    %31 = vector.shape_cast %30 : vector<8x128xbf16> to vector<1x8x128xbf16>
    %32 = vector.shape_cast %31 : vector<1x8x128xbf16> to vector<1x8x128xbf16>
    %33 = vector.broadcast %32 : vector<1x8x128xbf16> to vector<4x8x128xbf16>
    %c0_12 = arith.constant 0 : index
    %c0_13 = arith.constant 0 : index
    %c0_14 = arith.constant 0 : index
    %c0_15 = arith.constant 0 : index
    %34 = vector.load %arg9[%c0_12, %c0_13, %c0_14, %c0_15] : memref<1x4x128x32xbf16, #tpu.memory_space<vmem>>, vector<1x4x128x32xbf16>
    %35 = vector.shape_cast %34 : vector<1x4x128x32xbf16> to vector<4x128x32xbf16>
    "tpu.trace_start"() <{level = 10 : i32, message = "htc,hcd->htd"}> : () -> ()
    %cst_16 = arith.constant dense<0.000000e+00> : vector<4x8x32xf32>
    %36 = tpu.matmul %33, %35, %cst_16 {dimension_numbers = #tpu.dot_dimension_numbers<[2], [1], [1], [2], [0, 0, 0, 1, 1, 2], [0], [0]>} : vector<4x8x128xbf16>, vector<4x128x32xbf16>, vector<4x8x32xf32> -> vector<4x8x32xf32>
    "tpu.trace_stop"() : () -> ()
    %c0_17 = arith.constant 0 : index
    %c0_18 = arith.constant 0 : index
    %c0_19 = arith.constant 0 : index
    %c0_20 = arith.constant 0 : index
    %37 = vector.load %arg12[%c0_17, %c0_18, %c0_19, %c0_20] : memref<1x4x1x32xf32, #tpu.memory_space<vmem>>, vector<1x4x1x32xf32>
    %38 = vector.shape_cast %37 : vector<1x4x1x32xf32> to vector<4x1x32xf32>
    %39 = vector.broadcast %38 : vector<4x1x32xf32> to vector<4x8x32xf32>
    %40 = arith.addf %36, %39 : vector<4x8x32xf32>
    %c0_21 = arith.constant 0 : index
    %c0_22 = arith.constant 0 : index
    %c0_23 = arith.constant 0 : index
    %c0_24 = arith.constant 0 : index
    %41 = vector.load %arg10[%c0_21, %c0_22, %c0_23, %c0_24] : memref<1x4x128x32xbf16, #tpu.memory_space<vmem>>, vector<1x4x128x32xbf16>
    %42 = vector.shape_cast %41 : vector<1x4x128x32xbf16> to vector<4x128x32xbf16>
    "tpu.trace_start"() <{level = 10 : i32, message = "htc,hcd->htd"}> : () -> ()
    %cst_25 = arith.constant dense<0.000000e+00> : vector<4x8x32xf32>
    %43 = tpu.matmul %33, %42, %cst_25 {dimension_numbers = #tpu.dot_dimension_numbers<[2], [1], [1], [2], [0, 0, 0, 1, 1, 2], [0], [0]>} : vector<4x8x128xbf16>, vector<4x128x32xbf16>, vector<4x8x32xf32> -> vector<4x8x32xf32>
    "tpu.trace_stop"() : () -> ()
    %c0_26 = arith.constant 0 : index
    %c0_27 = arith.constant 0 : index
    %c0_28 = arith.constant 0 : index
    %c0_29 = arith.constant 0 : index
    %44 = vector.load %arg13[%c0_26, %c0_27, %c0_28, %c0_29] : memref<1x4x1x32xf32, #tpu.memory_space<vmem>>, vector<1x4x1x32xf32>
    %45 = vector.shape_cast %44 : vector<1x4x1x32xf32> to vector<4x1x32xf32>
    %46 = vector.broadcast %45 : vector<4x1x32xf32> to vector<4x8x32xf32>
    %47 = arith.addf %43, %46 : vector<4x8x32xf32>
    %c0_30 = arith.constant 0 : index
    %c0_31 = arith.constant 0 : index
    %c0_32 = arith.constant 0 : index
    %c0_33 = arith.constant 0 : index
    %48 = vector.load %arg11[%c0_30, %c0_31, %c0_32, %c0_33] : memref<1x4x128x32xbf16, #tpu.memory_space<vmem>>, vector<1x4x128x32xbf16>
    %49 = vector.shape_cast %48 : vector<1x4x128x32xbf16> to vector<4x128x32xbf16>
    "tpu.trace_start"() <{level = 10 : i32, message = "htc,hcd->htd"}> : () -> ()
    %cst_34 = arith.constant dense<0.000000e+00> : vector<4x8x32xf32>
    %50 = tpu.matmul %33, %49, %cst_34 {dimension_numbers = #tpu.dot_dimension_numbers<[2], [1], [1], [2], [0, 0, 0, 1, 1, 2], [0], [0]>} : vector<4x8x128xbf16>, vector<4x128x32xbf16>, vector<4x8x32xf32> -> vector<4x8x32xf32>
    "tpu.trace_stop"() : () -> ()
    %c0_35 = arith.constant 0 : index
    %c0_36 = arith.constant 0 : index
    %c0_37 = arith.constant 0 : index
    %c0_38 = arith.constant 0 : index
    %51 = vector.load %arg14[%c0_35, %c0_36, %c0_37, %c0_38] : memref<1x4x1x32xf32, #tpu.memory_space<vmem>>, vector<1x4x1x32xf32>
    %52 = vector.shape_cast %51 : vector<1x4x1x32xf32> to vector<4x1x32xf32>
    %53 = vector.broadcast %52 : vector<4x1x32xf32> to vector<4x8x32xf32>
    %54 = arith.addf %50, %53 : vector<4x8x32xf32>
    %55 = arith.truncf %40 : vector<4x8x32xf32> to vector<4x8x32xbf16>
    %56 = arith.truncf %47 : vector<4x8x32xf32> to vector<4x8x32xbf16>
    "tpu.trace_start"() <{level = 10 : i32, message = "hqd,hkd->hqk"}> : () -> ()
    %cst_39 = arith.constant dense<0.000000e+00> : vector<4x8x8xf32>
    %57 = tpu.matmul %55, %56, %cst_39 {dimension_numbers = #tpu.dot_dimension_numbers<[2], [2], [1], [1], [0, 0, 0, 1, 1, 1], [0], [0]>} : vector<4x8x32xbf16>, vector<4x8x32xbf16>, vector<4x8x8xf32> -> vector<4x8x8xf32>
    "tpu.trace_stop"() : () -> ()
    %cst_40 = arith.constant 0.176776692 : f32
    %58 = vector.broadcast %cst_40 : f32 to vector<4x8x8xf32>
    %59 = arith.mulf %57, %58 : vector<4x8x8xf32>
    %c0_41 = arith.constant 0 : index
    %c0_42 = arith.constant 0 : index
    %60 = vector.load %arg6[%c0_41, %c0_42] : memref<8x8xf32, #tpu.memory_space<vmem>>, vector<8x8xf32>
    %61 = vector.shape_cast %60 : vector<8x8xf32> to vector<1x8x8xf32>
    %62 = vector.broadcast %61 : vector<1x8x8xf32> to vector<4x8x8xf32>
    %63 = arith.addf %59, %62 : vector<4x8x8xf32>
    %cst_43 = arith.constant dense<0xFF800000> : vector<4x8xf32>
    %64 = vector.multi_reduction <maximumf>, %63, %cst_43 [2] : vector<4x8x8xf32> to vector<4x8xf32>
    %65 = vector.shape_cast %64 : vector<4x8xf32> to vector<4x8x1xf32>
    %66 = vector.broadcast %65 : vector<4x8x1xf32> to vector<4x8x8xf32>
    %67 = arith.subf %63, %66 : vector<4x8x8xf32>
    %68 = math.exp %67 : vector<4x8x8xf32>
    %cst_44 = arith.constant dense<0.000000e+00> : vector<4x8xf32>
    %69 = vector.multi_reduction <add>, %68, %cst_44 [2] : vector<4x8x8xf32> to vector<4x8xf32>
    %70 = vector.shape_cast %69 : vector<4x8xf32> to vector<4x8x1xf32>
    %71 = vector.broadcast %70 : vector<4x8x1xf32> to vector<4x8x8xf32>
    %72 = arith.divf %68, %71 : vector<4x8x8xf32>
    %73 = arith.truncf %72 : vector<4x8x8xf32> to vector<4x8x8xbf16>
    %74 = arith.truncf %54 : vector<4x8x32xf32> to vector<4x8x32xbf16>
    "tpu.trace_start"() <{level = 10 : i32, message = "hqk,hkd->hqd"}> : () -> ()
    %cst_45 = arith.constant dense<0.000000e+00> : vector<4x8x32xf32>
    %75 = tpu.matmul %73, %74, %cst_45 {dimension_numbers = #tpu.dot_dimension_numbers<[2], [1], [1], [2], [0, 0, 0, 1, 1, 2], [0], [0]>} : vector<4x8x8xbf16>, vector<4x8x32xbf16>, vector<4x8x32xf32> -> vector<4x8x32xf32>
    "tpu.trace_stop"() : () -> ()
    %76 = arith.truncf %75 : vector<4x8x32xf32> to vector<4x8x32xbf16>
    %c0_46 = arith.constant 0 : index
    %c0_47 = arith.constant 0 : index
    %c0_48 = arith.constant 0 : index
    %c0_49 = arith.constant 0 : index
    %77 = vector.load %arg15[%c0_46, %c0_47, %c0_48, %c0_49] : memref<1x4x32x128xbf16, #tpu.memory_space<vmem>>, vector<1x4x32x128xbf16>
    %78 = vector.shape_cast %77 : vector<1x4x32x128xbf16> to vector<4x32x128xbf16>
    "tpu.trace_start"() <{level = 10 : i32, message = "htd,hdc->htc"}> : () -> ()
    %cst_50 = arith.constant dense<0.000000e+00> : vector<4x8x128xf32>
    %79 = tpu.matmul %76, %78, %cst_50 {dimension_numbers = #tpu.dot_dimension_numbers<[2], [1], [1], [2], [0, 0, 0, 1, 1, 2], [0], [0]>} : vector<4x8x32xbf16>, vector<4x32x128xbf16>, vector<4x8x128xf32> -> vector<4x8x128xf32>
    "tpu.trace_stop"() : () -> ()
    %80 = vector.extract_strided_slice %79 {offsets = [0, 0, 0], sizes = [1, 8, 128], strides = [1, 1, 1]} : vector<4x8x128xf32> to vector<1x8x128xf32>
    %81 = vector.shape_cast %80 : vector<1x8x128xf32> to vector<8x128xf32>
    %82 = vector.extract_strided_slice %79 {offsets = [1, 0, 0], sizes = [1, 8, 128], strides = [1, 1, 1]} : vector<4x8x128xf32> to vector<1x8x128xf32>
    %83 = vector.shape_cast %82 : vector<1x8x128xf32> to vector<8x128xf32>
    %84 = arith.addf %81, %83 : vector<8x128xf32>
    %85 = vector.extract_strided_slice %79 {offsets = [2, 0, 0], sizes = [1, 8, 128], strides = [1, 1, 1]} : vector<4x8x128xf32> to vector<1x8x128xf32>
    %86 = vector.shape_cast %85 : vector<1x8x128xf32> to vector<8x128xf32>
    %87 = arith.addf %84, %86 : vector<8x128xf32>
    %88 = vector.extract_strided_slice %79 {offsets = [3, 0, 0], sizes = [1, 8, 128], strides = [1, 1, 1]} : vector<4x8x128xf32> to vector<1x8x128xf32>
    %89 = vector.shape_cast %88 : vector<1x8x128xf32> to vector<8x128xf32>
    %90 = arith.addf %87, %89 : vector<8x128xf32>
    %91 = arith.addf %3, %90 : vector<8x128xf32>
    %c0_51 = arith.constant 0 : index
    %c0_52 = arith.constant 0 : index
    %c0_53 = arith.constant 0 : index
    %92 = vector.load %arg16[%c0_51, %c0_52, %c0_53] : memref<1x1x128xf32, #tpu.memory_space<vmem>>, vector<1x1x128xf32>
    %93 = vector.shape_cast %92 : vector<1x1x128xf32> to vector<1x128xf32>
    %94 = vector.broadcast %93 : vector<1x128xf32> to vector<8x128xf32>
    %95 = arith.addf %91, %94 : vector<8x128xf32>
    %c0_54 = arith.constant 0 : index
    %c0_55 = arith.constant 0 : index
    %c0_56 = arith.constant 0 : index
    %96 = vector.load %arg17[%c0_54, %c0_55, %c0_56] : memref<1x1x128xf32, #tpu.memory_space<vmem>>, vector<1x1x128xf32>
    %97 = vector.shape_cast %96 : vector<1x1x128xf32> to vector<1x128xf32>
    %c0_57 = arith.constant 0 : index
    %c0_58 = arith.constant 0 : index
    %c0_59 = arith.constant 0 : index
    %98 = vector.load %arg18[%c0_57, %c0_58, %c0_59] : memref<1x1x128xf32, #tpu.memory_space<vmem>>, vector<1x1x128xf32>
    %99 = vector.shape_cast %98 : vector<1x1x128xf32> to vector<1x128xf32>
    %cst_60 = arith.constant dense<0.000000e+00> : vector<8xf32>
    %100 = vector.multi_reduction <add>, %95, %cst_60 [1] : vector<8x128xf32> to vector<8xf32>
    %101 = vector.shape_cast %100 : vector<8xf32> to vector<8x1xf32>
    %cst_61 = arith.constant 1.280000e+02 : f32
    %102 = vector.broadcast %cst_61 : f32 to vector<8x1xf32>
    %103 = arith.divf %101, %102 : vector<8x1xf32>
    %104 = vector.broadcast %103 : vector<8x1xf32> to vector<8x128xf32>
    %105 = arith.subf %95, %104 : vector<8x128xf32>
    %106 = arith.mulf %105, %105 : vector<8x128xf32>
    %cst_62 = arith.constant dense<0.000000e+00> : vector<8xf32>
    %107 = vector.multi_reduction <add>, %106, %cst_62 [1] : vector<8x128xf32> to vector<8xf32>
    %108 = vector.shape_cast %107 : vector<8xf32> to vector<8x1xf32>
    %cst_63 = arith.constant 1.280000e+02 : f32
    %109 = vector.broadcast %cst_63 : f32 to vector<8x1xf32>
    %110 = arith.divf %108, %109 : vector<8x1xf32>
    %111 = vector.broadcast %103 : vector<8x1xf32> to vector<8x128xf32>
    %112 = arith.subf %95, %111 : vector<8x128xf32>
    %cst_64 = arith.constant 9.99999974E-6 : f32
    %113 = vector.broadcast %cst_64 : f32 to vector<8x1xf32>
    %114 = arith.addf %110, %113 : vector<8x1xf32>
    %115 = math.rsqrt %114 : vector<8x1xf32>
    %116 = vector.broadcast %115 : vector<8x1xf32> to vector<8x128xf32>
    %117 = arith.mulf %112, %116 : vector<8x128xf32>
    %118 = vector.broadcast %97 : vector<1x128xf32> to vector<8x128xf32>
    %119 = arith.mulf %117, %118 : vector<8x128xf32>
    %120 = vector.broadcast %99 : vector<1x128xf32> to vector<8x128xf32>
    %121 = arith.addf %119, %120 : vector<8x128xf32>
    %c0_65 = arith.constant 0 : index
    %c0_66 = arith.constant 0 : index
    %c0_67 = arith.constant 0 : index
    %122 = vector.load %arg19[%c0_65, %c0_66, %c0_67] : memref<1x128x512xbf16, #tpu.memory_space<vmem>>, vector<1x128x512xbf16>
    %123 = vector.shape_cast %122 : vector<1x128x512xbf16> to vector<128x512xbf16>
    %124 = arith.truncf %121 : vector<8x128xf32> to vector<8x128xbf16>
    %cst_68 = arith.constant dense<0.000000e+00> : vector<8x512xf32>
    %125 = tpu.matmul %124, %123, %cst_68 {dimension_numbers = #tpu.dot_dimension_numbers<[1], [0], [0], [1], [0, 0, 1, 1], [], []>} : vector<8x128xbf16>, vector<128x512xbf16>, vector<8x512xf32> -> vector<8x512xf32>
    %c0_69 = arith.constant 0 : index
    %c0_70 = arith.constant 0 : index
    %c0_71 = arith.constant 0 : index
    %126 = vector.load %arg20[%c0_69, %c0_70, %c0_71] : memref<1x1x512xf32, #tpu.memory_space<vmem>>, vector<1x1x512xf32>
    %127 = vector.shape_cast %126 : vector<1x1x512xf32> to vector<1x512xf32>
    %128 = vector.broadcast %127 : vector<1x512xf32> to vector<8x512xf32>
    %129 = arith.addf %125, %128 : vector<8x512xf32>
    %cst_72 = arith.constant 5.000000e-01 : f32
    %130 = vector.broadcast %cst_72 : f32 to vector<8x512xf32>
    %131 = arith.mulf %130, %129 : vector<8x512xf32>
    %cst_73 = arith.constant 4.471500e-02 : f32
    %132 = vector.broadcast %cst_73 : f32 to vector<8x512xf32>
    %133 = arith.mulf %132, %129 : vector<8x512xf32>
    %134 = arith.mulf %133, %129 : vector<8x512xf32>
    %135 = arith.mulf %134, %129 : vector<8x512xf32>
    %136 = arith.addf %129, %135 : vector<8x512xf32>
    %cst_74 = arith.constant 0.797884583 : f32
    %137 = vector.broadcast %cst_74 : f32 to vector<8x512xf32>
    %138 = arith.mulf %137, %136 : vector<8x512xf32>
    %139 = math.tanh %138 : vector<8x512xf32>
    %cst_75 = arith.constant 1.000000e+00 : f32
    %140 = vector.broadcast %cst_75 : f32 to vector<8x512xf32>
    %141 = arith.addf %140, %139 : vector<8x512xf32>
    %142 = arith.mulf %131, %141 : vector<8x512xf32>
    %c0_76 = arith.constant 0 : index
    %c0_77 = arith.constant 0 : index
    %c0_78 = arith.constant 0 : index
    %143 = vector.load %arg21[%c0_76, %c0_77, %c0_78] : memref<1x512x128xbf16, #tpu.memory_space<vmem>>, vector<1x512x128xbf16>
    %144 = vector.shape_cast %143 : vector<1x512x128xbf16> to vector<512x128xbf16>
    %145 = arith.truncf %142 : vector<8x512xf32> to vector<8x512xbf16>
    %cst_79 = arith.constant dense<0.000000e+00> : vector<8x128xf32>
    %146 = tpu.matmul %145, %144, %cst_79 {dimension_numbers = #tpu.dot_dimension_numbers<[1], [0], [0], [1], [0, 0, 1, 1], [], []>} : vector<8x512xbf16>, vector<512x128xbf16>, vector<8x128xf32> -> vector<8x128xf32>
    %147 = arith.addf %95, %146 : vector<8x128xf32>
    %c0_80 = arith.constant 0 : index
    %c0_81 = arith.constant 0 : index
    %c0_82 = arith.constant 0 : index
    %148 = vector.load %arg22[%c0_80, %c0_81, %c0_82] : memref<1x1x128xf32, #tpu.memory_space<vmem>>, vector<1x1x128xf32>
    %149 = vector.shape_cast %148 : vector<1x1x128xf32> to vector<1x128xf32>
    %150 = vector.broadcast %149 : vector<1x128xf32> to vector<8x128xf32>
    %151 = arith.addf %147, %150 : vector<8x128xf32>
    %c0_83 = arith.constant 0 : index
    %c0_84 = arith.constant 0 : index
    %152 = vector.load %arg27[%c0_83, %c0_84] : memref<8x128xf32, #tpu.memory_space<vmem>>, vector<8x128xf32>
    tpu.vector_store %arg27[%c0_83, %c0_84], %151 {strides = array<i32>} : memref<8x128xf32, #tpu.memory_space<vmem>>, vector<8x128xf32>,
    %c1_i32 = arith.constant 1 : i32
    %153 = arith.cmpi eq, %arg1, %c1_i32 : i32
    %154 = arith.extui %153 : i1 to i32
    %c0_i32_85 = arith.constant 0 : i32
    %155 = arith.cmpi ne, %154, %c0_i32_85 : i32
    scf.if %155 {
      %c0_86 = arith.constant 0 : index
      %c0_87 = arith.constant 0 : index
      %156 = vector.load %arg23[%c0_86, %c0_87] : memref<1x128xf32, #tpu.memory_space<vmem>>, vector<1x128xf32>
      %c0_88 = arith.constant 0 : index
      %c0_89 = arith.constant 0 : index
      %157 = vector.load %arg24[%c0_88, %c0_89] : memref<1x128xf32, #tpu.memory_space<vmem>>, vector<1x128xf32>
      %cst_90 = arith.constant dense<0.000000e+00> : vector<8xf32>
      %158 = vector.multi_reduction <add>, %151, %cst_90 [1] : vector<8x128xf32> to vector<8xf32>
      %159 = vector.shape_cast %158 : vector<8xf32> to vector<8x1xf32>
      %cst_91 = arith.constant 1.280000e+02 : f32
      %160 = vector.broadcast %cst_91 : f32 to vector<8x1xf32>
      %161 = arith.divf %159, %160 : vector<8x1xf32>
      %162 = vector.broadcast %161 : vector<8x1xf32> to vector<8x128xf32>
      %163 = arith.subf %151, %162 : vector<8x128xf32>
      %164 = arith.mulf %163, %163 : vector<8x128xf32>
      %cst_92 = arith.constant dense<0.000000e+00> : vector<8xf32>
      %165 = vector.multi_reduction <add>, %164, %cst_92 [1] : vector<8x128xf32> to vector<8xf32>
      %166 = vector.shape_cast %165 : vector<8xf32> to vector<8x1xf32>
      %cst_93 = arith.constant 1.280000e+02 : f32
      %167 = vector.broadcast %cst_93 : f32 to vector<8x1xf32>
      %168 = arith.divf %166, %167 : vector<8x1xf32>
      %169 = vector.broadcast %161 : vector<8x1xf32> to vector<8x128xf32>
      %170 = arith.subf %151, %169 : vector<8x128xf32>
      %cst_94 = arith.constant 9.99999974E-6 : f32
      %171 = vector.broadcast %cst_94 : f32 to vector<8x1xf32>
      %172 = arith.addf %168, %171 : vector<8x1xf32>
      %173 = math.rsqrt %172 : vector<8x1xf32>
      %174 = vector.broadcast %173 : vector<8x1xf32> to vector<8x128xf32>
      %175 = arith.mulf %170, %174 : vector<8x128xf32>
      %176 = vector.broadcast %156 : vector<1x128xf32> to vector<8x128xf32>
      %177 = arith.mulf %175, %176 : vector<8x128xf32>
      %178 = vector.broadcast %157 : vector<1x128xf32> to vector<8x128xf32>
      %179 = arith.addf %177, %178 : vector<8x128xf32>
      %c0_95 = arith.constant 0 : index
      %c0_96 = arith.constant 0 : index
      %180 = vector.load %arg25[%c0_95, %c0_96] : memref<128x128xbf16, #tpu.memory_space<vmem>>, vector<128x128xbf16>
      %181 = arith.truncf %179 : vector<8x128xf32> to vector<8x128xbf16>
      %cst_97 = arith.constant dense<0.000000e+00> : vector<8x128xf32>
      %182 = tpu.matmul %181, %180, %cst_97 {dimension_numbers = #tpu.dot_dimension_numbers<[1], [0], [0], [1], [0, 0, 1, 1], [], []>} : vector<8x128xbf16>, vector<128x128xbf16>, vector<8x128xf32> -> vector<8x128xf32>
      %c0_98 = arith.constant 0 : index
      %c0_99 = arith.constant 0 : index
      %c0_100 = arith.constant 0 : index
      %183 = vector.load %arg26[%c0_98, %c0_99, %c0_100] : memref<1x8x128xf32, #tpu.memory_space<vmem>>, vector<1x8x128xf32>
      %184 = vector.shape_cast %183 : vector<1x8x128xf32> to vector<8x128xf32>
      %185 = vector.shape_cast %182 : vector<8x128xf32> to vector<1x8x128xf32>
      tpu.vector_store %arg26[%c0_98, %c0_99, %c0_100], %185 {strides = array<i32>} : memref<1x8x128xf32, #tpu.memory_space<vmem>>, vector<1x8x128xf32>,
    } else {
    }
    return
  }
  func.func @transform_0(%arg0: i32, %arg1: i32) -> (i32, i32, i32) {
    %c0_i32 = arith.constant 0 : i32
    %c0_i32_0 = arith.constant 0 : i32
    %c0_i32_1 = arith.constant 0 : i32
    return %arg0, %c0_i32, %c0_i32_0 : i32, i32, i32
  }
  func.func @transform_1(%arg0: i32, %arg1: i32) -> (i32, i32) {
    %c0_i32 = arith.constant 0 : i32
    %c0_i32_0 = arith.constant 0 : i32
    %c0_i32_1 = arith.constant 0 : i32
    return %c0_i32, %c0_i32_0 : i32, i32
  }
  func.func @transform_2(%arg0: i32, %arg1: i32) -> (i32, i32) {
    %c0_i32 = arith.constant 0 : i32
    %c0_i32_0 = arith.constant 0 : i32
    %c0_i32_1 = arith.constant 0 : i32
    return %c0_i32, %c0_i32_0 : i32, i32
  }
  func.func @transform_3(%arg0: i32, %arg1: i32) -> (i32, i32) {
    %c0_i32 = arith.constant 0 : i32
    %c0_i32_0 = arith.constant 0 : i32
    %c0_i32_1 = arith.constant 0 : i32
    return %c0_i32, %c0_i32_0 : i32, i32
  }
  func.func @transform_4(%arg0: i32, %arg1: i32) -> (i32, i32) {
    %c0_i32 = arith.constant 0 : i32
    %c0_i32_0 = arith.constant 0 : i32
    %c0_i32_1 = arith.constant 0 : i32
    return %c0_i32, %c0_i32_0 : i32, i32
  }
  func.func @transform_5(%arg0: i32, %arg1: i32) -> (i32, i32, i32) {
    %c0_i32 = arith.constant 0 : i32
    %c0_i32_0 = arith.constant 0 : i32
    %c0_i32_1 = arith.constant 0 : i32
    return %arg1, %c0_i32, %c0_i32_0 : i32, i32, i32
  }
  func.func @transform_6(%arg0: i32, %arg1: i32) -> (i32, i32, i32) {
    %c0_i32 = arith.constant 0 : i32
    %c0_i32_0 = arith.constant 0 : i32
    %c0_i32_1 = arith.constant 0 : i32
    return %arg1, %c0_i32, %c0_i32_0 : i32, i32, i32
  }
  func.func @transform_7(%arg0: i32, %arg1: i32) -> (i32, i32, i32, i32) {
    %c0_i32 = arith.constant 0 : i32
    %c0_i32_0 = arith.constant 0 : i32
    %c0_i32_1 = arith.constant 0 : i32
    %c0_i32_2 = arith.constant 0 : i32
    return %arg1, %c0_i32, %c0_i32_0, %c0_i32_1 : i32, i32, i32, i32
  }
  func.func @transform_8(%arg0: i32, %arg1: i32) -> (i32, i32, i32, i32) {
    %c0_i32 = arith.constant 0 : i32
    %c0_i32_0 = arith.constant 0 : i32
    %c0_i32_1 = arith.constant 0 : i32
    %c0_i32_2 = arith.constant 0 : i32
    return %arg1, %c0_i32, %c0_i32_0, %c0_i32_1 : i32, i32, i32, i32
  }
  func.func @transform_9(%arg0: i32, %arg1: i32) -> (i32, i32, i32, i32) {
    %c0_i32 = arith.constant 0 : i32
    %c0_i32_0 = arith.constant 0 : i32
    %c0_i32_1 = arith.constant 0 : i32
    %c0_i32_2 = arith.constant 0 : i32
    return %arg1, %c0_i32, %c0_i32_0, %c0_i32_1 : i32, i32, i32, i32
  }
  func.func @transform_10(%arg0: i32, %arg1: i32) -> (i32, i32, i32, i32) {
    %c0_i32 = arith.constant 0 : i32
    %c0_i32_0 = arith.constant 0 : i32
    %c0_i32_1 = arith.constant 0 : i32
    %c0_i32_2 = arith.constant 0 : i32
    return %arg1, %c0_i32, %c0_i32_0, %c0_i32_1 : i32, i32, i32, i32
  }
  func.func @transform_11(%arg0: i32, %arg1: i32) -> (i32, i32, i32, i32) {
    %c0_i32 = arith.constant 0 : i32
    %c0_i32_0 = arith.constant 0 : i32
    %c0_i32_1 = arith.constant 0 : i32
    %c0_i32_2 = arith.constant 0 : i32
    return %arg1, %c0_i32, %c0_i32_0, %c0_i32_1 : i32, i32, i32, i32
  }
  func.func @transform_12(%arg0: i32, %arg1: i32) -> (i32, i32, i32, i32) {
    %c0_i32 = arith.constant 0 : i32
    %c0_i32_0 = arith.constant 0 : i32
    %c0_i32_1 = arith.constant 0 : i32
    %c0_i32_2 = arith.constant 0 : i32
    return %arg1, %c0_i32, %c0_i32_0, %c0_i32_1 : i32, i32, i32, i32
  }
  func.func @transform_13(%arg0: i32, %arg1: i32) -> (i32, i32, i32, i32) {
    %c0_i32 = arith.constant 0 : i32
    %c0_i32_0 = arith.constant 0 : i32
    %c0_i32_1 = arith.constant 0 : i32
    %c0_i32_2 = arith.constant 0 : i32
    return %arg1, %c0_i32, %c0_i32_0, %c0_i32_1 : i32, i32, i32, i32
  }
  func.func @transform_14(%arg0: i32, %arg1: i32) -> (i32, i32, i32) {
    %c0_i32 = arith.constant 0 : i32
    %c0_i32_0 = arith.constant 0 : i32
    %c0_i32_1 = arith.constant 0 : i32
    return %arg1, %c0_i32, %c0_i32_0 : i32, i32, i32
  }
  func.func @transform_15(%arg0: i32, %arg1: i32) -> (i32, i32, i32) {
    %c0_i32 = arith.constant 0 : i32
    %c0_i32_0 = arith.constant 0 : i32
    %c0_i32_1 = arith.constant 0 : i32
    return %arg1, %c0_i32, %c0_i32_0 : i32, i32, i32
  }
  func.func @transform_16(%arg0: i32, %arg1: i32) -> (i32, i32, i32) {
    %c0_i32 = arith.constant 0 : i32
    %c0_i32_0 = arith.constant 0 : i32
    %c0_i32_1 = arith.constant 0 : i32
    return %arg1, %c0_i32, %c0_i32_0 : i32, i32, i32
  }
  func.func @transform_17(%arg0: i32, %arg1: i32) -> (i32, i32, i32) {
    %c0_i32 = arith.constant 0 : i32
    %c0_i32_0 = arith.constant 0 : i32
    %c0_i32_1 = arith.constant 0 : i32
    return %arg1, %c0_i32, %c0_i32_0 : i32, i32, i32
  }
  func.func @transform_18(%arg0: i32, %arg1: i32) -> (i32, i32, i32) {
    %c0_i32 = arith.constant 0 : i32
    %c0_i32_0 = arith.constant 0 : i32
    %c0_i32_1 = arith.constant 0 : i32
    return %arg1, %c0_i32, %c0_i32_0 : i32, i32, i32
  }
  func.func @transform_19(%arg0: i32, %arg1: i32) -> (i32, i32, i32) {
    %c0_i32 = arith.constant 0 : i32
    %c0_i32_0 = arith.constant 0 : i32
    %c0_i32_1 = arith.constant 0 : i32
    return %arg1, %c0_i32, %c0_i32_0 : i32, i32, i32
  }
  func.func @transform_20(%arg0: i32, %arg1: i32) -> (i32, i32, i32) {
    %c0_i32 = arith.constant 0 : i32
    %c0_i32_0 = arith.constant 0 : i32
    %c0_i32_1 = arith.constant 0 : i32
    return %arg1, %c0_i32, %c0_i32_0 : i32, i32, i32
  }
  func.func @transform_21(%arg0: i32, %arg1: i32) -> (i32, i32) {
    %c0_i32 = arith.constant 0 : i32
    %c0_i32_0 = arith.constant 0 : i32
    %c0_i32_1 = arith.constant 0 : i32
    return %c0_i32, %c0_i32_0 : i32, i32
  }
  func.func @transform_22(%arg0: i32, %arg1: i32) -> (i32, i32) {
    %c0_i32 = arith.constant 0 : i32
    %c0_i32_0 = arith.constant 0 : i32
    %c0_i32_1 = arith.constant 0 : i32
    return %c0_i32, %c0_i32_0 : i32, i32
  }
  func.func @transform_23(%arg0: i32, %arg1: i32) -> (i32, i32) {
    %c0_i32 = arith.constant 0 : i32
    %c0_i32_0 = arith.constant 0 : i32
    %c0_i32_1 = arith.constant 0 : i32
    return %c0_i32, %c0_i32_0 : i32, i32
  }
  func.func @transform_24(%arg0: i32, %arg1: i32) -> (i32, i32, i32) {
    %c0_i32 = arith.constant 0 : i32
    %c0_i32_0 = arith.constant 0 : i32
    %c0_i32_1 = arith.constant 0 : i32
    return %arg0, %c0_i32, %c0_i32_0 : i32, i32, i32
  }
}

</mosaic_0001>

<bundles_post_ra>
// kernel: tpu_custom_call.1
= control target key start
LH: loop header
LB: loop body
LE: loop exit
PB: predicated region body
PF: predicated region fallthrough
CT: control target
= control target key end

     0   :  { %s6363_s0 = inlined_call_operand.vmem [shape: f32[2,8,128], index: 0, kind: input, shape index: {}]   ;;  %s6364_s1 = inlined_call_operand.vmem [shape: bf16[128,128], index: 1, kind: input, shape index: {}]   ;;  %s6365_s2 = inlined_call_operand.vmem [shape: f32[1,128], index: 2, kind: input, shape index: {}]   ;;  %s6366_s3 = inlined_call_operand.vmem [shape: f32[8,128], index: 3, kind: input, shape index: {}]   ;;  %s6367_s4 = inlined_call_operand.vmem [shape: f32[8,8], index: 4, kind: input, shape index: {}]   ;;  %s6368_s5 = inlined_call_operand.vmem [shape: f32[2,1,128], index: 5, kind: input, shape index: {}]   ;;  %s6369_s6 = inlined_call_operand.vmem [shape: f32[2,1,128], index: 6, kind: input, shape index: {}]   ;;  %s6370_s7 = inlined_call_operand.vmem [shape: bf16[2,4,128,32], index: 7, kind: input, shape index: {}]   ;;  %s6371_s8 = inlined_call_operand.vmem [shape: bf16[2,4,128,32], index: 8, kind: input, shape index: {}]   ;;  %s6372_s9 = inlined_call_operand.vmem [shape: bf16[2,4,128,32], index: 9, kind: input, shape index: {}]   ;;  %s6373_s10 = inlined_call_operand.vmem [shape: f32[2,4,1,32], index: 10, kind: input, shape index: {}]   ;;  %s6374_s11 = inlined_call_operand.vmem [shape: f32[2,4,1,32], index: 11, kind: input, shape index: {}]   ;;  %s6375_s12 = inlined_call_operand.vmem [shape: f32[2,4,1,32], index: 12, kind: input, shape index: {}]   ;;  %s6376_s13 = inlined_call_operand.vmem [shape: bf16[2,4,32,128], index: 13, kind: input, shape index: {}]   ;;  %s6377_s14 = inlined_call_operand.vmem [shape: f32[2,1,128], index: 14, kind: input, shape index: {}]   ;;  %s6378_s15 = inlined_call_operand.vmem [shape: f32[2,1,128], index: 15, kind: input, shape index: {}]   ;;  %s6379_s16 = inlined_call_operand.vmem [shape: f32[2,1,128], index: 16, kind: input, shape index: {}]   ;;  %s6380_s17 = inlined_call_operand.vmem [shape: bf16[2,128,512], index: 17, kind: input, shape index: {}]   ;;  %s6381_s18 = inlined_call_operand.vmem [shape: f32[2,1,512], index: 18, kind: input, shape index: {}]   ;;  %s6382_s19 = inlined_call_operand.vmem [shape: bf16[2,512,128], index: 19, kind: input, shape index: {}]   ;;  %s6383_s20 = inlined_call_operand.vmem [shape: f32[2,1,128], index: 20, kind: input, shape index: {}]   ;;  %s6384_s21 = inlined_call_operand.vmem [shape: f32[1,128], index: 21, kind: input, shape index: {}]   ;;  %s6385_s22 = inlined_call_operand.vmem [shape: f32[1,128], index: 22, kind: input, shape index: {}]   ;;  %s6386_s23 = inlined_call_operand.vmem [shape: bf16[128,128], index: 23, kind: input, shape index: {}]   ;;  %s6387_s24 = inlined_call_operand.hbm [shape: f32[2,8,128], index: 24, kind: output, shape index: {}]  }
   0x1   :  { %6407 = sst [smem:[#allocation21_spill]] %s6363_s0 }
   0x2   :  { %6408 = sst [smem:[#allocation22_spill]] %s6364_s1 }
   0x3   :  { %6409 = sst [smem:[#allocation23_spill]] %s6365_s2 }
   0x4   :  { %6410 = sst [smem:[#allocation24_spill]] %s6366_s3 }
   0x5   :  { %6411 = sst [smem:[#allocation25_spill]] %s6367_s4 }
   0x6   :  { %6412 = sst [smem:[#allocation26_spill]] %s6368_s5 }
   0x7   :  { %6413 = sst [smem:[#allocation27_spill]] %s6369_s6 }
   0x8   :  { %6414 = sst [smem:[#allocation28_spill]] %s6370_s7 }
   0x9   :  { %6415 = sst [smem:[#allocation29_spill]] %s6371_s8 }
   0xa   :  { %6416 = sst [smem:[#allocation30_spill]] %s6372_s9 }
   0xb   :  { %6417 = sst [smem:[#allocation31_spill]] %s6373_s10 }
   0xc   :  { %6418 = sst [smem:[#allocation32_spill]] %s6374_s11 }
   0xd   :  { %6419 = sst [smem:[#allocation33_spill]] %s6375_s12 }
   0xe   :  { %6420 = sst [smem:[#allocation34_spill]] %s6376_s13 }
   0xf   :  { %6421 = sst [smem:[#allocation35_spill]] %s6378_s15 }
  0x10   :  { %6422 = sst [smem:[#allocation36_spill]] %s6382_s19 }
  0x11   :  { %6423 = sst [smem:[#allocation37_spill]] %s6383_s20 }
  0x12   :  { %6424 = sst [smem:[#allocation38_spill]] %s6384_s21 }
  0x13   :  { %6425 = sst [smem:[#allocation39_spill]] %s6385_s22 }
  0x14   :  { %6426 = sst [smem:[#allocation40_spill]] %s6386_s23 }
  0x15   :  { %6427 = sst [smem:[#allocation41_spill]] %s6387_s24 }
  0x16   :  { %29 = vsyncpa [#allocation4], 0 }
  0x17   :  { %31 = vsyncpa [#allocation4 + $0x1], 0  ;;  %s5645_s5 = smov 0   ;;  %s5647_s26 = smov 0  }
  0x18   :  { %s5649_s27 = smov 0   ;;  %s5651_s28 = smov 0  }
  0x19   :  { %s5653_s6 = smov 0   ;;  %s5655_s2 = smov 0  }
  0x1a   :  { %s5657_s29 = smov 0   ;;  %s5659_s0 = smov 0  }
  0x1b LB: > { %6428 = sst [smem:[#allocation6_spill]] %s5482_s5  ;;  %s4297_s7 = sadd.s32 4294967295, %s5510_s0   ;;  %s5510_s0 = sphi %s5659_s0, %s37_s0   ;;  %s5506_s29 = sphi %s5657_s29, %s6494_s29   ;;  %s5502_s2 = sphi %s5655_s2, %s6493_s2   ;;  %s5498_s6 = sphi %s5653_s6, %s6492_s6   ;;  %s5494_s28 = sphi %s5651_s28, %s6491_s28   ;;  %s5490_s27 = sphi %s5649_s27, %s6490_s27   ;;  %s5486_s26 = sphi %s5647_s26, %s6489_s26   ;;  %s5482_s5 = sphi %s5645_s5, %s6488_s5  }
  0x1c   : > { %6429 = sst [smem:[#allocation7_spill]] %s5486_s26  ;;  %s4298_s30 = sadd.s32 4294967294, %s5510_s0  }
  0x1d   : > { %6430 = sst [smem:[#allocation8_spill]] %s5490_s27  ;;  %s46_s3 = sadd.s32 1, %s5502_s2 }
  0x1e   : > { %6431 = sst [smem:[#allocation9_spill]] %s5494_s28  ;;  %p47_p0 = scmp.ge.s32.totalorder %s46_s3, 2 }
  0x1f   : > { %6432 = sst [smem:[#allocation10_spill]] %s5498_s6  ;;  %s49_s25 = sadd.s32 1, %s5506_s29 }
  0x20   : > { %6433 = sst [smem:[#allocation11_spill]] %s5502_s2  ;;  %p655_p1 = scmp.ne.s32.totalorder %s5490_s27, %s5486_s26 }
  0x21   : > { %6434 = sst [smem:[#allocation12_spill]] %s5506_s29  ;;  %p656_p2 = scmp.eq.s32.totalorder %s4297_s7, 3 }
  0x22   : > { %6435 = sst [smem:[#allocation13_spill]] %s5510_s0  ;;  %s6496_s3 = smov (%p47_p0, %s46_s3), 0 }
  0x23   : > { %6436 = sst [smem:[#allocation14_spill]] %s6496_s3  ;;  %s6498_s25 = smov (!%p47_p0, %s49_s25), %s5506_s29 }
  0x24   : > { %p5694_p3 = por %p656_p2, %p655_p1  ;;  %p661_p4 = scmp.ne.s32.totalorder %s5486_s26, %s5482_s5 }
  0x25   : > { %p51_p5 = scmp.ge.s32.totalorder %s6498_s25, 2  ;;  %p662_p6 = scmp.eq.s32.totalorder %s4298_s30, 3 }
  0x26   : > { %s6437_s8 = scalar_select %p5694_p3, 1, 0 }
  0x27   : > { %p4301_p7 = scmp.ge.s32.totalorder %s5510_s0, 1  ;;  %p820_p8 = scmp.lt.s32.totalorder %s5510_s0, 5 }
  0x28   : > { %6438 = sst [smem:[#allocation15_spill]] %s6437_s8  ;;  %s6500_s25 = smov (%p51_p5, %s6498_s25), 0 }
  0x29   : > { %6439 = sst [smem:[#allocation16_spill]] %s6500_s25  ;;  %p5704_p9 = por %p662_p6, %p661_p4 }
  0x2a   : > { %p821_p10 = pnand %p4301_p7, %p820_p8  ;;  %s642_s1 = ssub.s32 %s5506_s29, %s6500_s25 }
  0x2b   : > { %s6440_s4 = scalar_select %p5704_p9, 1, 0 }
  0x2c   : > { %s645_s7 = sadd.s32 1, %s5490_s27  ;;  %p643_p11 = scmp.eq.s32.totalorder %s642_s1, 0 }
  0x2d   : > { %6441 = sst [smem:[#allocation17_spill]] %s6440_s4  ;;  %824 = sbr.rel (%p821_p10) target bundleno = 3271 (0xcc7), region = 116 }
  0x2e   : > { %s5712_s3 = scalar_select %p643_p11, %s5490_s27, %s645_s7  }
  0x30   : > { %6442 = sst [smem:[#allocation18_spill]] %s5712_s3 }
  0x34   : > { %s6394_s30 = sand.u32 1, %s5486_s26   ;;  %p949_p12 = scmp.lt.s32.totalorder %s5498_s6, 1 }
  0x35   : > { %s5718_s2 = sshll.u32 %s6394_s30, 3  ;;  %p953_p13 = scmp.lt.s32.totalorder %s5494_s28, 1 }
  0x36   : > { %s950_s4 = scalar_select %p949_p12, %s5498_s6, 1 }
  0x37   : > { %s5723_s5 = scalar_select %p953_p13, %s5494_s28, 1 }
  0x38   : > { %s4303_s1 = sshll.u32 %s950_s4, 3  ;;  %s6443_s29 = sld [smem:[#allocation21_spill]] }
  0x39   : > { %s4543_s21 = sshll.u32 %s5723_s5, 8  ;;  %s6446_s20 = sld [smem:[#allocation28_spill]] }
  0x3a   : > { %s6447_s7 = sld [smem:[#allocation29_spill]]  ;;  %s6448_s9 = sld [smem:[#allocation30_spill]] }
  0x3b   : > { %s5755_s26 = sshll.u32 %s5723_s5, 2  ;;  %s6449_s10 = sld [smem:[#allocation31_spill]] }
  0x3c   : > { %s6451_s11 = sld [smem:[#allocation32_spill]]  ;;  %s6452_s12 = sld [smem:[#allocation33_spill]] }
  0x3d   : > { %s6454_s13 = sld [smem:[#allocation34_spill]]  ;;  %s1008_s27 = scalar_lea.vmem %s6381_s18, %s5755_s26 }
  0x3e   : > { %s5728_s3 = scalar_lea.vmem %s6443_s29, %s4303_s1  ;;  %s4546_s1 = sshll.u32 %s5723_s5, 6 }
  0x3f   : > { %s5742_s4 = scalar_lea.vmem %s6446_s20, %s4543_s21  ;;  %s6456_s8 = sld [smem:[#allocation36_spill]] }
  0x40   : > { %s5747_s29 = scalar_lea.vmem %s6447_s7, %s4543_s21  ;;  %s5752_s0 = scalar_lea.vmem %s6448_s9, %s4543_s21 }
  0x41   : > { %s5761_s20 = scalar_lea.vmem %s6449_s10, %s5755_s26  ;;  %s6457_s19 = sld [smem:[#allocation37_spill]] }
  0x42   : > { %6450 = sst [smem:[#allocation19_spill]] %s5761_s20  ;;  %s5767_s28 = scalar_lea.vmem %s6451_s11, %s5755_s26 }
  0x43   : > { %s5773_s7 = scalar_lea.vmem %s6452_s12, %s5755_s26  ;;  %s5779_s6 = scalar_lea.vmem %s6454_s13, %s4546_s1 }
  0x44   : > { %6453 = sst [smem:[#allocation20_spill]] %s5773_s7  ;;  %s5796_s7 = scalar_lea.vmem %s6380_s17, %s4543_s21 }
  0x45   : > { %s5805_s9 = scalar_lea.vmem %s6456_s8, %s4543_s21  ;;  %s948_s11 = scalar_lea.vmem [#allocation3], %s5718_s2 }
  0x46   : > { %s6458_s23 = sld [smem:[#allocation9_spill]] }
  0x47   : > { %s1016_s15 = scalar_lea.vmem %s6457_s19, %s5723_s5 }
  0x4c   : > { %p4320_p0 = scmp.ne.s32.totalorder %s6458_s23, 0 }
  0x4d   : > { %s6459_s30 = sld [smem:[#allocation22_spill]] (!%p4320_p0)  ;;  %v5512_v1 = vmov (!%p4320_p0), 0.0   ;;  %vm5513_vm0 = vmmov (!%p4320_p0), 0   ;;  %v1022_v9 = vld [vmem:[%s5728_s3] sm:$0xff] (!%p4320_p0)  ;;  %s6460_s19 = sld [smem:[#allocation23_spill]] (!%p4320_p0) }
  0x4e   : > { %1021 = sbr.rel (%p4320_p0) target bundleno = 332 (0x14c), region = 120  ;;  %4747 = vmatprep.subr.bf16.mxu0 (!%p4320_p0), %v5512_v1  ;;  %4763 = vmatprep.mubr.msk.bf16.mxu0 (!%p4320_p0), %vm5513_vm0, %v5512_v1  ;;  %v1039_v10 = vpack.c.bf16 (!%p4320_p0), %v1022_v9, %v1022_v9  ;;  %s6461_s10 = sld [smem:[#allocation24_spill]] (!%p4320_p0) }
  0x53   : > { %v5185_v0 = vld [vmem:[%s6459_s30] sm:$0xff] (!%p4320_p0)   ;;  %v5186_v2 = vld [vmem:[%s6459_s30 + $0x8] sm:$0xff] (!%p4320_p0)   ;;  %v5187_v3 = vld [vmem:[%s6459_s30 + $0x10] sm:$0xff] (!%p4320_p0)  }
  0x54   : > { %4748 = vmatpush3.bf16.msra.mxu0 (!%p4320_p0), %v5185_v0  ;;  %v5188_v4 = vld [vmem:[%s6459_s30 + $0x18] sm:$0xff] (!%p4320_p0)   ;;  %v5189_v5 = vld [vmem:[%s6459_s30 + $0x20] sm:$0xff] (!%p4320_p0)   ;;  %v5190_v6 = vld [vmem:[%s6459_s30 + $0x28] sm:$0xff] (!%p4320_p0)  }
  0x55   : > { %4749 = vmatprep.subr.bf16.mxu0 %v5512_v1  ;;  %v5191_v7 = vld [vmem:[%s6459_s30 + $0x30] sm:$0xff]   ;;  %v5192_v8 = vld [vmem:[%s6459_s30 + $0x38] sm:$0xff]   ;;  %v4321_v11 = vld [vmem:[%s6460_s19] ss:$0 sm:$0xff] }
  0x56   : > { %v1135_v13 = vld [vmem:[%s6461_s10] sm:$0xff] }
  0x58   : > { %4750 = vmatpush3.bf16.msra.mxu0 %v5186_v2 }
  0x59   : > { %4751 = vmatprep.subr.bf16.mxu0 %v5512_v1 }
  0x5c   : > { %4752 = vmatpush3.bf16.msra.mxu0 %v5187_v3 }
  0x5d   : > { %4753 = vmatprep.subr.bf16.mxu0 %v5512_v1 }
  0x60   : > { %4754 = vmatpush3.bf16.msra.mxu0 %v5188_v4 }
  0x61   : > { %4755 = vmatprep.subr.bf16.mxu0 %v5512_v1 }
  0x64   : > { %4756 = vmatpush3.bf16.msra.mxu0 %v5189_v5 }
  0x65   : > { %4757 = vmatprep.subr.bf16.mxu0 %v5512_v1 }
  0x68   : > { %4758 = vmatpush3.bf16.msra.mxu0 %v5190_v6 }
  0x69   : > { %4759 = vmatprep.subr.bf16.mxu0 %v5512_v1 }
  0x6c   : > { %4760 = vmatpush3.bf16.msra.mxu0 %v5191_v7 }
  0x6d   : > { %4761 = vmatprep.subr.bf16.mxu0 %v5512_v1 }
  0x70   : > { %4762 = vmatpush3.bf16.msra.mxu0 %v5192_v8 }
  0x73   : > { %4764 = vmatmul.mubr.bf16.vlgmr.msra.gmra.mrb[0].mxu0 %v1039_v10 }
 0x146   : > { %v1129_v12 = vpop.f32.mrb[0].mxu0 }
 0x147   : > { %v1130_v14 = vadd.f32 %v4321_v11, %v1129_v12  ;;  %v4765_v15 = vpop.f32.mrb[1].mxu0 }
 0x148   : > { %v1132_v16 = vpop.f32.mrb[2].mxu0 }
 0x149   : > { %v1136_v17 = vadd.f32 %v1135_v13, %v1130_v14  ;;  %v4766_v18 = vpop.f32.mrb[3].mxu0 }
 0x14b   : > { %1137 = vst [vmem:[#allocation2] sm:$0xff] %v1136_v17 }
 0x14c PF: > { %v5193_v20 = vld [vmem:[%s5742_s4] sm:$0xff]   ;;  %v5514_v22 = vmov 0.0   ;;  %v5195_v23 = vld [vmem:[%s5742_s4 + $0x8] sm:$0xff]   ;;  %v5197_v25 = vld [vmem:[%s5742_s4 + $0x10] sm:$0xff]   ;;  %vm5515_vm1 = vmmov 0   ;;  %s6462_s23 = sld [smem:[#allocation26_spill]]  ;;  %s6469_s24 = scalar_lea.vmem %s6377_s14, %s5723_s5 }
 0x14d   : > { %v5194_v21 = vld [vmem:[%s5742_s4 + $0x40] sm:$0xff]   ;;  %4767 = vmatprep.subr.bf16.mxu0 %v5514_v22  ;;  %4787 = vmatprep.subr.bf16.mxu1 %v5514_v22  ;;  %v5196_v24 = vld [vmem:[%s5742_s4 + $0x48] sm:$0xff]   ;;  %v5198_v26 = vld [vmem:[%s5742_s4 + $0x50] sm:$0xff]   ;;  %s6464_s1 = sld [smem:[#allocation27_spill]]  ;;  %vm2508_vm2 = vcmask 261120   ;;  %vm2758_vm3 = vcmask 1043456  }
 0x14e   : > { %4768 = vmatpush3.bf16.msra.mxu0 %v5193_v20  ;;  %4788 = vmatpush3.bf16.msra.mxu1 %v5194_v21  ;;  %v5199_v31 = vld [vmem:[%s5742_s4 + $0x18] sm:$0xff]   ;;  %v5201_v33 = vld [vmem:[%s5742_s4 + $0x20] sm:$0xff]   ;;  %v5203_v35 = vld [vmem:[%s5742_s4 + $0x28] sm:$0xff]   ;;  %s6468_s21 = sld [smem:[#allocation25_spill]]  ;;  %vm2702_vm4 = vcmask 64512   ;;  %s6470_s3 = sld [smem:[#allocation35_spill]] }
 0x14f   : > { %4769 = vmatprep.subr.bf16.mxu0 %v5514_v22  ;;  %4789 = vmatprep.subr.bf16.mxu1 %v5514_v22  ;;  %v5200_v32 = vld [vmem:[%s5742_s4 + $0x58] sm:$0xff]   ;;  %v5202_v34 = vld [vmem:[%s5742_s4 + $0x60] sm:$0xff]   ;;  %v5204_v36 = vld [vmem:[%s5742_s4 + $0x68] sm:$0xff]  }
 0x150   : > { %v5205_v37 = vld [vmem:[%s5742_s4 + $0x30] sm:$0xff]   ;;  %v5207_v39 = vld [vmem:[%s5742_s4 + $0x38] sm:$0xff]   ;;  %4783 = vmatprep.mubr.msk.bf16.mxu0 %vm5515_vm1, %v5514_v22  ;;  %4803 = vmatprep.mubr.msk.bf16.mxu1 %vm5515_vm1, %v5514_v22  ;;  %v5209_v50 = vld [vmem:[%s5742_s4 + $0x80] sm:$0xff]  }
 0x151   : > { %v5206_v38 = vld [vmem:[%s5742_s4 + $0x70] sm:$0xff]   ;;  %v5208_v40 = vld [vmem:[%s5742_s4 + $0x78] sm:$0xff]   ;;  %v5210_v51 = vld [vmem:[%s5742_s4 + $0xc0] sm:$0xff]  }
 0x152   : > { %v1138_v19 = vld [vmem:[#allocation2] sm:$0xff]  ;;  %4770 = vmatpush3.bf16.msra.mxu0 %v5195_v23  ;;  %4790 = vmatpush3.bf16.msra.mxu1 %v5196_v24  ;;  %s6463_s12 = scalar_lea.vmem %s6462_s23, %s5723_s5  ;;  %v5211_v53 = vld [vmem:[%s5742_s4 + $0x88] sm:$0xff]   ;;  %v5213_v55 = vld [vmem:[%s5742_s4 + $0x90] sm:$0xff]  }
 0x153   : > { %1141 = vadd.xlane.f32.xlu0 %v1138_v19  ;;  %4771 = vmatprep.subr.bf16.mxu0 %v5514_v22  ;;  %v4330_v45 = vld [vmem:[%s6463_s12] ss:$0 sm:$0xff]  ;;  %s6465_s13 = scalar_lea.vmem %s6464_s1, %s5723_s5  ;;  %v5212_v54 = vld [vmem:[%s5742_s4 + $0xc8] sm:$0xff]   ;;  %v5214_v56 = vld [vmem:[%s5742_s4 + $0xd0] sm:$0xff]   ;;  %s6472_s12 = scalar_lea.vmem %s6379_s16, %s5723_s5 }
 0x154   : > { %4791 = vmatprep.subr.bf16.mxu1 %v5514_v22  ;;  %v4331_v47 = vld [vmem:[%s6465_s13] ss:$0 sm:$0xff]  ;;  %v5215_v57 = vld [vmem:[%s5742_s4 + $0x98] sm:$0xff]   ;;  %v5219_v61 = vld [vmem:[%s5742_s4 + $0xa8] sm:$0xff]   ;;  %s6474_s1 = sld [smem:[#allocation9_spill]] }
 0x155   : > { %v5216_v58 = vld [vmem:[%s5742_s4 + $0xd8] sm:$0xff]   ;;  %v5217_v59 = vld [vmem:[%s5742_s4 + $0xa0] sm:$0xff]   ;;  %v5220_v62 = vld [vmem:[%s5742_s4 + $0xe8] sm:$0xff]  }
 0x156   : > { %4772 = vmatpush3.bf16.msra.mxu0 %v5197_v25  ;;  %4792 = vmatpush3.bf16.msra.mxu1 %v5198_v26  ;;  %v5218_v60 = vld [vmem:[%s5742_s4 + $0xe0] sm:$0xff]   ;;  %v5221_v63 = vld [vmem:[%s5742_s4 + $0xb0] sm:$0xff]   ;;  %v5223_v1 = vld [vmem:[%s5742_s4 + $0xb8] sm:$0xff]  }
 0x157   : > { %4773 = vmatprep.subr.bf16.mxu0 %v5514_v22  ;;  %4793 = vmatprep.subr.bf16.mxu1 %v5514_v22  ;;  %v5222_v0 = vld [vmem:[%s5742_s4 + $0xf0] sm:$0xff]   ;;  %v5224_v2 = vld [vmem:[%s5742_s4 + $0xf8] sm:$0xff]   ;;  %v5225_v3 = vld [vmem:[%s5747_s29] sm:$0xff]   ;;  %s6466_s4 = sld [smem:[#allocation19_spill]] }
 0x158   : > { %v5226_v4 = vld [vmem:[%s5747_s29 + $0x40] sm:$0xff]   ;;  %v5227_v5 = vld [vmem:[%s5747_s29 + $0x8] sm:$0xff]   ;;  %v5229_v7 = vld [vmem:[%s5747_s29 + $0x10] sm:$0xff]  }
 0x159   : > { %v5228_v6 = vld [vmem:[%s5747_s29 + $0x48] sm:$0xff]   ;;  %v5230_v8 = vld [vmem:[%s5747_s29 + $0x50] sm:$0xff]   ;;  %v5231_v9 = vld [vmem:[%s5747_s29 + $0x18] sm:$0xff]  }
 0x15a   : > { %4774 = vmatpush3.bf16.msra.mxu0 %v5199_v31  ;;  %4794 = vmatpush3.bf16.msra.mxu1 %v5200_v32  ;;  %v5232_v10 = vld [vmem:[%s5747_s29 + $0x58] sm:$0xff]   ;;  %v5233_v11 = vld [vmem:[%s5747_s29 + $0x20] sm:$0xff]   ;;  %v5235_v13 = vld [vmem:[%s5747_s29 + $0x28] sm:$0xff]   ;;  %p4528_p1 = scmp.ne.s32.totalorder %s6474_s1, 1 }
 0x15b   : > { %4775 = vmatprep.subr.bf16.mxu0 %v5514_v22  ;;  %4795 = vmatprep.subr.bf16.mxu1 %v5514_v22  ;;  %v5234_v12 = vld [vmem:[%s5747_s29 + $0x60] sm:$0xff]   ;;  %v5236_v14 = vld [vmem:[%s5747_s29 + $0x68] sm:$0xff]   ;;  %v5237_v15 = vld [vmem:[%s5747_s29 + $0x30] sm:$0xff]   ;;  %vm5518_vm5 = vmmov (!%p4528_p1), 0   ;;  %s6478_s1 = sld [smem:[#allocation39_spill]] (!%p4528_p1) }
 0x15c   : > { %v5238_v16 = vld [vmem:[%s5747_s29 + $0x70] sm:$0xff]   ;;  %v5239_v17 = vld [vmem:[%s5747_s29 + $0x38] sm:$0xff]   ;;  %v5242_v20 = vld [vmem:[%s5747_s29 + $0xc0] sm:$0xff]  }
 0x15d   : > { %v5240_v18 = vld [vmem:[%s5747_s29 + $0x78] sm:$0xff]   ;;  %v5243_v21 = vld [vmem:[%s5747_s29 + $0x88] sm:$0xff]   ;;  %v5245_v24 = vld [vmem:[%s5747_s29 + $0x90] sm:$0xff]  }
 0x15e   : > { %4776 = vmatpush3.bf16.msra.mxu0 %v5201_v33  ;;  %4796 = vmatpush3.bf16.msra.mxu1 %v5202_v34  ;;  %v5244_v23 = vld [vmem:[%s5747_s29 + $0xc8] sm:$0xff]   ;;  %v5246_v25 = vld [vmem:[%s5747_s29 + $0xd0] sm:$0xff]   ;;  %v5247_v26 = vld [vmem:[%s5747_s29 + $0x98] sm:$0xff]  }
 0x15f   : > { %4777 = vmatprep.subr.bf16.mxu0 %v5514_v22  ;;  %4797 = vmatprep.subr.bf16.mxu1 %v5514_v22  ;;  %v5252_v31 = vld [vmem:[%s5747_s29 + $0xe8] sm:$0xff]   ;;  %v5253_v32 = vld [vmem:[%s5747_s29 + $0xb0] sm:$0xff]   ;;  %v5255_v34 = vld [vmem:[%s5747_s29 + $0xb8] sm:$0xff]  }
 0x160   : > { %v5254_v33 = vld [vmem:[%s5747_s29 + $0xf0] sm:$0xff]  }
 0x162   : > { %4778 = vmatpush3.bf16.msra.mxu0 %v5203_v35  ;;  %4798 = vmatpush3.bf16.msra.mxu1 %v5204_v36  ;;  %v5256_v35 = vld [vmem:[%s5747_s29 + $0xf8] sm:$0xff]   ;;  %v5257_v36 = vld [vmem:[%s5752_s0] sm:$0xff]  }
 0x163   : > { %4779 = vmatprep.subr.bf16.mxu0 %v5514_v22  ;;  %4799 = vmatprep.subr.bf16.mxu1 %v5514_v22 }
 0x166   : > { %4780 = vmatpush3.bf16.msra.mxu0 %v5205_v37  ;;  %4800 = vmatpush3.bf16.msra.mxu1 %v5206_v38  ;;  %v5258_v37 = vld [vmem:[%s5752_s0 + $0x40] sm:$0xff]   ;;  %v5259_v38 = vld [vmem:[%s5752_s0 + $0x8] sm:$0xff]  }
 0x167   : > { %4781 = vmatprep.subr.bf16.mxu0 %v5514_v22  ;;  %4801 = vmatprep.subr.bf16.mxu1 %v5514_v22 }
 0x16a   : > { %4782 = vmatpush3.bf16.msra.mxu0 %v5207_v39  ;;  %4802 = vmatpush3.bf16.msra.mxu1 %v5208_v40  ;;  %v5260_v39 = vld [vmem:[%s5752_s0 + $0x48] sm:$0xff]   ;;  %v5261_v40 = vld [vmem:[%s5752_s0 + $0x10] sm:$0xff]  }
 0x16b   : > { %4807 = vmatprep.subr.bf16.mxu0 %v5514_v22  ;;  %4827 = vmatprep.subr.bf16.mxu1 %v5514_v22 }
 0x1e0   : > { %v1142_v27 = vpop.xlane.xlu0 %1141 }
 0x1e1   : > { %v1144_v28 = vmul.f32 0.0078125, %v1142_v27  ;;  %v5248_v27 = vld [vmem:[%s5747_s29 + $0xd8] sm:$0xff]  }
 0x1e3   : > { %v1145_v29 = vsub.f32 %v1138_v19, %v1144_v28  ;;  %v5241_v19 = vld [vmem:[%s5747_s29 + $0x80] sm:$0xff]  }
 0x1e4   : > { %v5249_v28 = vld [vmem:[%s5747_s29 + $0xa0] sm:$0xff]  }
 0x1e5   : > { %v1146_v30 = vmul.f32 %v1145_v29, %v1145_v29 }
 0x1e7   : > { %1147 = vadd.xlane.f32.xlu0 %v1146_v30  ;;  %v5251_v30 = vld [vmem:[%s5747_s29 + $0xa8] sm:$0xff]  }
 0x274   : > { %v1148_v41 = vpop.xlane.xlu0 %1147 }
 0x275   : > { %v1149_v42 = vmul.f32 0.0078125, %v1148_v41  ;;  %v5262_v41 = vld [vmem:[%s5752_s0 + $0x50] sm:$0xff]  }
 0x277   : > { %v1150_v43 = vadd.f32 1e-05, %v1149_v42  ;;  %v5263_v42 = vld [vmem:[%s5752_s0 + $0x18] sm:$0xff]  }
 0x279   : > { %5377 = vrsqrt.f32 %v1150_v43  ;;  %v5264_v43 = vld [vmem:[%s5752_s0 + $0x58] sm:$0xff]  }
 0x283   : > { %v5378_v44 = vpop.eup %5377 }
 0x284   : > { %v1152_v46 = vmul.f32 %v5378_v44, %v1145_v29  ;;  %v5250_v29 = vld [vmem:[%s5747_s29 + $0xe0] sm:$0xff]   ;;  %s6467_s29 = sld [smem:[#allocation20_spill]] }
 0x285   : > { %v5265_v44 = vld [vmem:[%s5752_s0 + $0x20] sm:$0xff]  }
 0x286   : > { %v1159_v48 = vmul.f32 %v4330_v45, %v1152_v46  ;;  %v5266_v45 = vld [vmem:[%s5752_s0 + $0x60] sm:$0xff]   ;;  %v5267_v46 = vld [vmem:[%s5752_s0 + $0x28] sm:$0xff]  }
 0x288   : > { %v1166_v49 = vadd.f32 %v4331_v47, %v1159_v48  ;;  %v5268_v47 = vld [vmem:[%s5752_s0 + $0x68] sm:$0xff]   ;;  %v5269_v48 = vld [vmem:[%s5752_s0 + $0x30] sm:$0xff]  }
 0x28a   : > { %v5894_v52 = vpack.c.bf16 %v1166_v49, %v1166_v49  ;;  %v5270_v49 = vld [vmem:[%s5752_s0 + $0x70] sm:$0xff]  }
 0x28c   : > { %4784 = vmatmul.mubr.bf16.vlgmr.msra.gmra.mrb[0].mxu0 %v5894_v52  ;;  %4804 = vmatmul.mubr.bf16.vlgmr.msra.gmra.mrb[0].mxu1 %v5894_v52 }
 0x28d   : > { %4808 = vmatpush3.bf16.msra.mxu0 %v5209_v50  ;;  %4828 = vmatpush3.bf16.msra.mxu1 %v5210_v51  ;;  %v5271_v50 = vld [vmem:[%s5752_s0 + $0x38] sm:$0xff]  }
 0x28e   : > { %4809 = vmatprep.subr.bf16.mxu0 %v5514_v22  ;;  %4829 = vmatprep.subr.bf16.mxu1 %v5514_v22  ;;  %v5272_v51 = vld [vmem:[%s5752_s0 + $0x78] sm:$0xff]  }
 0x28f   : > { %4823 = vmatprep.mubr.msk.bf16.mxu0 %vm5515_vm1, %v5514_v22  ;;  %4843 = vmatprep.mubr.msk.bf16.mxu1 %vm5515_vm1, %v5514_v22 }
 0x291   : > { %4810 = vmatpush3.bf16.msra.mxu0 %v5211_v53  ;;  %4830 = vmatpush3.bf16.msra.mxu1 %v5212_v54  ;;  %v5273_v53 = vld [vmem:[%s5752_s0 + $0x80] sm:$0xff]  }
 0x292   : > { %4811 = vmatprep.subr.bf16.mxu0 %v5514_v22  ;;  %4831 = vmatprep.subr.bf16.mxu1 %v5514_v22  ;;  %v5274_v54 = vld [vmem:[%s5752_s0 + $0xc0] sm:$0xff]  }
 0x295   : > { %4812 = vmatpush3.bf16.msra.mxu0 %v5213_v55  ;;  %4832 = vmatpush3.bf16.msra.mxu1 %v5214_v56  ;;  %v5275_v55 = vld [vmem:[%s5752_s0 + $0x88] sm:$0xff]  }
 0x296   : > { %4813 = vmatprep.subr.bf16.mxu0 %v5514_v22  ;;  %4833 = vmatprep.subr.bf16.mxu1 %v5514_v22  ;;  %v5276_v56 = vld [vmem:[%s5752_s0 + $0xc8] sm:$0xff]  }
 0x299   : > { %4814 = vmatpush3.bf16.msra.mxu0 %v5215_v57  ;;  %4834 = vmatpush3.bf16.msra.mxu1 %v5216_v58  ;;  %v5277_v57 = vld [vmem:[%s5752_s0 + $0x90] sm:$0xff]  }
 0x29a   : > { %4815 = vmatprep.subr.bf16.mxu0 %v5514_v22  ;;  %4835 = vmatprep.subr.bf16.mxu1 %v5514_v22  ;;  %v5278_v58 = vld [vmem:[%s5752_s0 + $0xd0] sm:$0xff]  }
 0x29d   : > { %4816 = vmatpush3.bf16.msra.mxu0 %v5217_v59  ;;  %4836 = vmatpush3.bf16.msra.mxu1 %v5218_v60  ;;  %v5279_v59 = vld [vmem:[%s5752_s0 + $0x98] sm:$0xff]  }
 0x29e   : > { %4817 = vmatprep.subr.bf16.mxu0 %v5514_v22  ;;  %4837 = vmatprep.subr.bf16.mxu1 %v5514_v22  ;;  %v5280_v60 = vld [vmem:[%s5752_s0 + $0xd8] sm:$0xff]  }
 0x2a1   : > { %4818 = vmatpush3.bf16.msra.mxu0 %v5219_v61  ;;  %4838 = vmatpush3.bf16.msra.mxu1 %v5220_v62  ;;  %v5281_v61 = vld [vmem:[%s5752_s0 + $0xa0] sm:$0xff]  }
 0x2a2   : > { %4819 = vmatprep.subr.bf16.mxu0 %v5514_v22  ;;  %4839 = vmatprep.subr.bf16.mxu1 %v5514_v22  ;;  %v5282_v62 = vld [vmem:[%s5752_s0 + $0xe0] sm:$0xff]  }
 0x2a5   : > { %4820 = vmatpush3.bf16.msra.mxu0 %v5221_v63  ;;  %4840 = vmatpush3.bf16.msra.mxu1 %v5222_v0  ;;  %v5283_v63 = vld [vmem:[%s5752_s0 + $0xa8] sm:$0xff]  }
 0x2a6   : > { %4821 = vmatprep.subr.bf16.mxu0 %v5514_v22  ;;  %4841 = vmatprep.subr.bf16.mxu1 %v5514_v22  ;;  %v5284_v0 = vld [vmem:[%s5752_s0 + $0xe8] sm:$0xff]  }
 0x2a9   : > { %4822 = vmatpush3.bf16.msra.mxu0 %v5223_v1  ;;  %4842 = vmatpush3.bf16.msra.mxu1 %v5224_v2  ;;  %v5285_v1 = vld [vmem:[%s5752_s0 + $0xb0] sm:$0xff]  }
 0x2aa   : > { %4847 = vmatprep.subr.bf16.mxu0 %v5514_v22  ;;  %4867 = vmatprep.subr.bf16.mxu1 %v5514_v22  ;;  %v5286_v2 = vld [vmem:[%s5752_s0 + $0xf0] sm:$0xff]  }
 0x2ac   : > { %4824 = vmatmul.mubr.bf16.vlgmr.msra.gmra.mrb[4].mxu0 %v5894_v52  ;;  %4844 = vmatmul.mubr.bf16.vlgmr.msra.gmra.mrb[4].mxu1 %v5894_v52 }
 0x2ad   : > { %4848 = vmatpush3.bf16.msra.mxu0 %v5225_v3  ;;  %4868 = vmatpush3.bf16.msra.mxu1 %v5226_v4  ;;  %v5287_v3 = vld [vmem:[%s5752_s0 + $0xb8] sm:$0xff]  }
 0x2ae   : > { %4849 = vmatprep.subr.bf16.mxu0 %v5514_v22  ;;  %4869 = vmatprep.subr.bf16.mxu1 %v5514_v22  ;;  %v5288_v4 = vld [vmem:[%s5752_s0 + $0xf8] sm:$0xff]  }
 0x2af   : > { %4863 = vmatprep.mubr.msk.bf16.mxu0 %vm5515_vm1, %v5514_v22  ;;  %4883 = vmatprep.mubr.msk.bf16.mxu1 %vm5515_vm1, %v5514_v22 }
 0x2b1   : > { %4850 = vmatpush3.bf16.msra.mxu0 %v5227_v5  ;;  %4870 = vmatpush3.bf16.msra.mxu1 %v5228_v6 }
 0x2b2   : > { %4851 = vmatprep.subr.bf16.mxu0 %v5514_v22  ;;  %4871 = vmatprep.subr.bf16.mxu1 %v5514_v22 }
 0x2b5   : > { %4852 = vmatpush3.bf16.msra.mxu0 %v5229_v7  ;;  %4872 = vmatpush3.bf16.msra.mxu1 %v5230_v8 }
 0x2b6   : > { %4853 = vmatprep.subr.bf16.mxu0 %v5514_v22  ;;  %4873 = vmatprep.subr.bf16.mxu1 %v5514_v22 }
 0x2b9   : > { %4854 = vmatpush3.bf16.msra.mxu0 %v5231_v9  ;;  %4874 = vmatpush3.bf16.msra.mxu1 %v5232_v10 }
 0x2ba   : > { %4855 = vmatprep.subr.bf16.mxu0 %v5514_v22  ;;  %4875 = vmatprep.subr.bf16.mxu1 %v5514_v22 }
 0x2bd   : > { %4856 = vmatpush3.bf16.msra.mxu0 %v5233_v11  ;;  %4876 = vmatpush3.bf16.msra.mxu1 %v5234_v12 }
 0x2be   : > { %4857 = vmatprep.subr.bf16.mxu0 %v5514_v22  ;;  %4877 = vmatprep.subr.bf16.mxu1 %v5514_v22 }
 0x2c1   : > { %4858 = vmatpush3.bf16.msra.mxu0 %v5235_v13  ;;  %4878 = vmatpush3.bf16.msra.mxu1 %v5236_v14 }
 0x2c2   : > { %4859 = vmatprep.subr.bf16.mxu0 %v5514_v22  ;;  %4879 = vmatprep.subr.bf16.mxu1 %v5514_v22 }
 0x2c5   : > { %4860 = vmatpush3.bf16.msra.mxu0 %v5237_v15  ;;  %4880 = vmatpush3.bf16.msra.mxu1 %v5238_v16 }
 0x2c6   : > { %4861 = vmatprep.subr.bf16.mxu0 %v5514_v22  ;;  %4881 = vmatprep.subr.bf16.mxu1 %v5514_v22 }
 0x2c9   : > { %4862 = vmatpush3.bf16.msra.mxu0 %v5239_v17  ;;  %4882 = vmatpush3.bf16.msra.mxu1 %v5240_v18 }
 0x2ca   : > { %4887 = vmatprep.subr.bf16.mxu0 %v5514_v22  ;;  %4907 = vmatprep.subr.bf16.mxu1 %v5514_v22 }
 0x2cc   : > { %4864 = vmatmul.mubr.bf16.vlgmr.msra.gmra.mrb[8].mxu0 %v5894_v52  ;;  %4884 = vmatmul.mubr.bf16.vlgmr.msra.gmra.mrb[8].mxu1 %v5894_v52 }
 0x2cd   : > { %4888 = vmatpush3.bf16.msra.mxu0 %v5241_v19  ;;  %4908 = vmatpush3.bf16.msra.mxu1 %v5242_v20  ;;  %v4368_v20 = vld [vmem:[%s5767_s28] ss:$0 sm:$0xff] }
 0x2ce   : > { %4889 = vmatprep.subr.bf16.mxu0 %v5514_v22  ;;  %4909 = vmatprep.subr.bf16.mxu1 %v5514_v22 }
 0x2cf   : > { %4903 = vmatprep.mubr.msk.bf16.mxu0 %vm5515_vm1, %v5514_v22  ;;  %4923 = vmatprep.mubr.msk.bf16.mxu1 %vm5515_vm1, %v5514_v22 }
 0x2d1   : > { %4890 = vmatpush3.bf16.msra.mxu0 %v5243_v21  ;;  %4910 = vmatpush3.bf16.msra.mxu1 %v5244_v23  ;;  %v4369_v21 = vld [vmem:[%s5767_s28 + $0x1] ss:$0 sm:$0xff] }
 0x2d2   : > { %4891 = vmatprep.subr.bf16.mxu0 %v5514_v22  ;;  %4911 = vmatprep.subr.bf16.mxu1 %v5514_v22 }
 0x2d5   : > { %4892 = vmatpush3.bf16.msra.mxu0 %v5245_v24  ;;  %4912 = vmatpush3.bf16.msra.mxu1 %v5246_v25 }
 0x2d6   : > { %4893 = vmatprep.subr.bf16.mxu0 %v5514_v22  ;;  %4913 = vmatprep.subr.bf16.mxu1 %v5514_v22 }
 0x2d9   : > { %4894 = vmatpush3.bf16.msra.mxu0 %v5247_v26  ;;  %4914 = vmatpush3.bf16.msra.mxu1 %v5248_v27 }
 0x2da   : > { %4895 = vmatprep.subr.bf16.mxu0 %v5514_v22  ;;  %4915 = vmatprep.subr.bf16.mxu1 %v5514_v22 }
 0x2dd   : > { %4896 = vmatpush3.bf16.msra.mxu0 %v5249_v28  ;;  %4916 = vmatpush3.bf16.msra.mxu1 %v5250_v29 }
 0x2de   : > { %4897 = vmatprep.subr.bf16.mxu0 %v5514_v22  ;;  %4917 = vmatprep.subr.bf16.mxu1 %v5514_v22 }
 0x2e1   : > { %4898 = vmatpush3.bf16.msra.mxu0 %v5251_v30  ;;  %4918 = vmatpush3.bf16.msra.mxu1 %v5252_v31 }
 0x2e2   : > { %4899 = vmatprep.subr.bf16.mxu0 %v5514_v22  ;;  %4919 = vmatprep.subr.bf16.mxu1 %v5514_v22 }
 0x2e5   : > { %4900 = vmatpush3.bf16.msra.mxu0 %v5253_v32  ;;  %4920 = vmatpush3.bf16.msra.mxu1 %v5254_v33 }
 0x2e6   : > { %4901 = vmatprep.subr.bf16.mxu0 %v5514_v22  ;;  %4921 = vmatprep.subr.bf16.mxu1 %v5514_v22 }
 0x2e9   : > { %4902 = vmatpush3.bf16.msra.mxu0 %v5255_v34  ;;  %4922 = vmatpush3.bf16.msra.mxu1 %v5256_v35  ;;  %v4332_v35 = vld [vmem:[%s6466_s4] ss:$0 sm:$0xff] }
 0x2ea   : > { %4927 = vmatprep.subr.bf16.mxu0 %v5514_v22  ;;  %4947 = vmatprep.subr.bf16.mxu1 %v5514_v22 }
 0x2ec   : > { %4904 = vmatmul.mubr.bf16.vlgmr.msra.gmra.mrb[12].mxu0 %v5894_v52  ;;  %4924 = vmatmul.mubr.bf16.vlgmr.msra.gmra.mrb[12].mxu1 %v5894_v52 }
 0x2ed   : > { %4928 = vmatpush3.bf16.msra.mxu0 %v5257_v36  ;;  %4948 = vmatpush3.bf16.msra.mxu1 %v5258_v37  ;;  %v4333_v36 = vld [vmem:[%s6466_s4 + $0x1] ss:$0 sm:$0xff] }
 0x2ee   : > { %4929 = vmatprep.subr.bf16.mxu0 %v5514_v22  ;;  %4949 = vmatprep.subr.bf16.mxu1 %v5514_v22 }
 0x2ef   : > { %4943 = vmatprep.mubr.msk.bf16.mxu0 %vm5515_vm1, %v5514_v22  ;;  %4963 = vmatprep.mubr.msk.bf16.mxu1 %vm5515_vm1, %v5514_v22 }
 0x2f1   : > { %4930 = vmatpush3.bf16.msra.mxu0 %v5259_v38  ;;  %4950 = vmatpush3.bf16.msra.mxu1 %v5260_v39 }
 0x2f2   : > { %4931 = vmatprep.subr.bf16.mxu0 %v5514_v22  ;;  %4951 = vmatprep.subr.bf16.mxu1 %v5514_v22 }
 0x2f5   : > { %4932 = vmatpush3.bf16.msra.mxu0 %v5261_v40  ;;  %4952 = vmatpush3.bf16.msra.mxu1 %v5262_v41 }
 0x2f6   : > { %4933 = vmatprep.subr.bf16.mxu0 %v5514_v22  ;;  %4953 = vmatprep.subr.bf16.mxu1 %v5514_v22 }
 0x2f9   : > { %4934 = vmatpush3.bf16.msra.mxu0 %v5263_v42  ;;  %4954 = vmatpush3.bf16.msra.mxu1 %v5264_v43  ;;  %v4370_v43 = vld [vmem:[%s5767_s28 + $0x2] ss:$0 sm:$0xff] }
 0x2fa   : > { %4935 = vmatprep.subr.bf16.mxu0 %v5514_v22  ;;  %4955 = vmatprep.subr.bf16.mxu1 %v5514_v22 }
 0x2fd   : > { %4936 = vmatpush3.bf16.msra.mxu0 %v5265_v44  ;;  %4956 = vmatpush3.bf16.msra.mxu1 %v5266_v45  ;;  %v4371_v44 = vld [vmem:[%s5767_s28 + $0x3] ss:$0 sm:$0xff] }
 0x2fe   : > { %4937 = vmatprep.subr.bf16.mxu0 %v5514_v22  ;;  %4957 = vmatprep.subr.bf16.mxu1 %v5514_v22 }
 0x301   : > { %4938 = vmatpush3.bf16.msra.mxu0 %v5267_v46  ;;  %4958 = vmatpush3.bf16.msra.mxu1 %v5268_v47 }
 0x302   : > { %4939 = vmatprep.subr.bf16.mxu0 %v5514_v22  ;;  %4959 = vmatprep.subr.bf16.mxu1 %v5514_v22 }
 0x305   : > { %4940 = vmatpush3.bf16.msra.mxu0 %v5269_v48  ;;  %4960 = vmatpush3.bf16.msra.mxu1 %v5270_v49 }
 0x306   : > { %4941 = vmatprep.subr.bf16.mxu0 %v5514_v22  ;;  %4961 = vmatprep.subr.bf16.mxu1 %v5514_v22 }
 0x309   : > { %4942 = vmatpush3.bf16.msra.mxu0 %v5271_v50  ;;  %4962 = vmatpush3.bf16.msra.mxu1 %v5272_v51 }
 0x30a   : > { %4967 = vmatprep.subr.bf16.mxu0 %v5514_v22  ;;  %4987 = vmatprep.subr.bf16.mxu1 %v5514_v22 }
 0x30c   : > { %4944 = vmatmul.mubr.bf16.vlgmr.msra.gmra.mrb[16].mxu0 %v5894_v52  ;;  %4964 = vmatmul.mubr.bf16.vlgmr.msra.gmra.mrb[16].mxu1 %v5894_v52 }
 0x30d   : > { %4968 = vmatpush3.bf16.msra.mxu0 %v5273_v53  ;;  %4988 = vmatpush3.bf16.msra.mxu1 %v5274_v54 }
 0x30e   : > { %4969 = vmatprep.subr.bf16.mxu0 %v5514_v22  ;;  %4989 = vmatprep.subr.bf16.mxu1 %v5514_v22 }
 0x30f   : > { %4983 = vmatprep.mubr.msk.bf16.mxu0 %vm5515_vm1, %v5514_v22  ;;  %5003 = vmatprep.mubr.msk.bf16.mxu1 %vm5515_vm1, %v5514_v22 }
 0x311   : > { %4970 = vmatpush3.bf16.msra.mxu0 %v5275_v55  ;;  %4990 = vmatpush3.bf16.msra.mxu1 %v5276_v56 }
 0x312   : > { %4971 = vmatprep.subr.bf16.mxu0 %v5514_v22  ;;  %4991 = vmatprep.subr.bf16.mxu1 %v5514_v22 }
 0x315   : > { %4972 = vmatpush3.bf16.msra.mxu0 %v5277_v57  ;;  %4992 = vmatpush3.bf16.msra.mxu1 %v5278_v58  ;;  %v4334_v58 = vld [vmem:[%s6466_s4 + $0x2] ss:$0 sm:$0xff] }
 0x316   : > { %4973 = vmatprep.subr.bf16.mxu0 %v5514_v22  ;;  %4993 = vmatprep.subr.bf16.mxu1 %v5514_v22 }
 0x319   : > { %4974 = vmatpush3.bf16.msra.mxu0 %v5279_v59  ;;  %4994 = vmatpush3.bf16.msra.mxu1 %v5280_v60  ;;  %v4335_v59 = vld [vmem:[%s6466_s4 + $0x3] ss:$0 sm:$0xff] }
 0x31a   : > { %4975 = vmatprep.subr.bf16.mxu0 %v5514_v22  ;;  %4995 = vmatprep.subr.bf16.mxu1 %v5514_v22 }
 0x31d   : > { %4976 = vmatpush3.bf16.msra.mxu0 %v5281_v61  ;;  %4996 = vmatpush3.bf16.msra.mxu1 %v5282_v62 }
 0x31e   : > { %4977 = vmatprep.subr.bf16.mxu0 %v5514_v22  ;;  %4997 = vmatprep.subr.bf16.mxu1 %v5514_v22 }
 0x321   : > { %4978 = vmatpush3.bf16.msra.mxu0 %v5283_v63  ;;  %4998 = vmatpush3.bf16.msra.mxu1 %v5284_v0 }
 0x322   : > { %4979 = vmatprep.subr.bf16.mxu0 %v5514_v22  ;;  %4999 = vmatprep.subr.bf16.mxu1 %v5514_v22 }
 0x325   : > { %4980 = vmatpush3.bf16.msra.mxu0 %v5285_v1  ;;  %5000 = vmatpush3.bf16.msra.mxu1 %v5286_v2  ;;  %v4404_v2 = vld [vmem:[%s6467_s29] ss:$0 sm:$0xff] }
 0x326   : > { %4981 = vmatprep.subr.bf16.mxu0 %v5514_v22  ;;  %5001 = vmatprep.subr.bf16.mxu1 %v5514_v22 }
 0x329   : > { %4982 = vmatpush3.bf16.msra.mxu0 %v5287_v3  ;;  %5002 = vmatpush3.bf16.msra.mxu1 %v5288_v4  ;;  %v4405_v3 = vld [vmem:[%s6467_s29 + $0x1] ss:$0 sm:$0xff] }
 0x32a   : > { %5007 = vmatprep.subr.bf16.mxu0 %v5514_v22  ;;  %5013 = vmatprep.subr.bf16.mxu1 %v5514_v22 }
 0x32c   : > { %4984 = vmatmul.mubr.bf16.vlgmr.msra.gmra.mrb[20].mxu0 %v5894_v52  ;;  %5004 = vmatmul.mubr.bf16.vlgmr.msra.gmra.mrb[20].mxu1 %v5894_v52 }
 0x32d   : > { %5009 = vmatprep.mubr.msk.bf16.mxu0 %vm5515_vm1, %v5514_v22  ;;  %5015 = vmatprep.mubr.msk.bf16.mxu1 %vm5515_vm1, %v5514_v22 }
 0x35f   : > { %v1342_v5 = vpop.f32.mrb[0].mxu0  ;;  %v1430_v6 = vpop.f32.mrb[0].mxu1 }
 0x360   : > { %v4785_v7 = vpop.f32.mrb[1].mxu0  ;;  %v4805_v8 = vpop.f32.mrb[1].mxu1  ;;  %v1343_v39 = vadd.f32 %v4332_v35, %v1342_v5  ;;  %v1431_v40 = vadd.f32 %v4333_v36, %v1430_v6  ;;  %v2697_v36 = vld [vmem:[%s6468_s21] sm:$0xff] }
 0x361   : > { %v1345_v9 = vpop.f32.mrb[2].mxu0  ;;  %v1433_v10 = vpop.f32.mrb[2].mxu1 }
 0x362   : > { %v4786_v11 = vpop.f32.mrb[3].mxu0  ;;  %v4806_v12 = vpop.f32.mrb[3].mxu1  ;;  %v2500_v41 = vpack.c.bf16 %v1343_v39, %v1343_v39  ;;  %v2501_v42 = vpack.c.bf16 %v1431_v40, %v1431_v40 }
 0x37f   : > { %v1518_v13 = vpop.f32.mrb[4].mxu0  ;;  %v1606_v14 = vpop.f32.mrb[4].mxu1 }
 0x380   : > { %v4825_v15 = vpop.f32.mrb[5].mxu0  ;;  %v4845_v52 = vpop.f32.mrb[5].mxu1  ;;  %v1519_v62 = vadd.f32 %v4334_v58, %v1518_v13  ;;  %v1607_v63 = vadd.f32 %v4335_v59, %v1606_v14 }
 0x381   : > { %v1521_v16 = vpop.f32.mrb[6].mxu0  ;;  %v1609_v17 = vpop.f32.mrb[6].mxu1 }
 0x382   : > { %v4826_v18 = vpop.f32.mrb[7].mxu0  ;;  %v4846_v19 = vpop.f32.mrb[7].mxu1  ;;  %v2502_v0 = vpack.c.bf16 %v1519_v62, %v1519_v62  ;;  %v2503_v1 = vpack.c.bf16 %v1607_v63, %v1607_v63  ;;  %v4406_v17 = vld [vmem:[%s6467_s29 + $0x2] ss:$0 sm:$0xff] }
 0x383   : > { %v4407_v18 = vld [vmem:[%s6467_s29 + $0x3] ss:$0 sm:$0xff]  ;;  %s6475_s29 = sld [smem:[#allocation40_spill]] (!%p4528_p1) }
 0x389   : > { %s6476_s21 = smov (!%p4528_p1), %s6475_s29 }
 0x39f   : > { %v1786_v23 = vpop.f32.mrb[8].mxu0  ;;  %v1874_v24 = vpop.f32.mrb[8].mxu1 }
 0x3a0   : > { %v1787_v25 = vadd.f32 %v4368_v20, %v1786_v23  ;;  %v1875_v26 = vadd.f32 %v4369_v21, %v1874_v24  ;;  %v4865_v27 = vpop.f32.mrb[9].mxu0  ;;  %v4885_v28 = vpop.f32.mrb[9].mxu1 }
 0x3a1   : > { %v1789_v29 = vpop.f32.mrb[10].mxu0  ;;  %v1877_v30 = vpop.f32.mrb[10].mxu1 }
 0x3a2   : > { %v2504_v31 = vpack.c.bf16 %v1787_v25, %v1787_v25  ;;  %v2505_v32 = vpack.c.bf16 %v1875_v26, %v1875_v26  ;;  %v4866_v33 = vpop.f32.mrb[11].mxu0  ;;  %v4886_v34 = vpop.f32.mrb[11].mxu1 }
 0x3a4   : > { %v2513_v37 = vsel %vm2508_vm2, %v2504_v31, 0  ;;  %v2559_v38 = vsel %vm2508_vm2, %v2505_v32, 0 }
 0x3a5   : > { %5008 = vmatpush3.bf16.xpose.msra.mxu0 %v2513_v37  ;;  %5014 = vmatpush3.bf16.xpose.msra.mxu1 %v2559_v38 }
 0x3a6   : > { %5019 = vmatprep.subr.bf16.mxu0 %v5514_v22  ;;  %5025 = vmatprep.subr.bf16.mxu1 %v5514_v22 }
 0x3ac   : > { %5010 = vmatmul.mubr.msk.bf16.vlgmr.msra.gmra.mrb[24].mxu0 %vm2508_vm2, %v2500_v41  ;;  %5016 = vmatmul.mubr.msk.bf16.vlgmr.msra.gmra.mrb[24].mxu1 %vm2508_vm2, %v2501_v42 }
 0x3ad   : > { %5021 = vmatprep.mubr.msk.bf16.mxu0 %vm5515_vm1, %v5514_v22  ;;  %5027 = vmatprep.mubr.msk.bf16.mxu1 %vm5515_vm1, %v5514_v22 }
 0x3bf   : > { %v1962_v45 = vpop.f32.mrb[12].mxu0  ;;  %v2050_v46 = vpop.f32.mrb[12].mxu1 }
 0x3c0   : > { %v1963_v47 = vadd.f32 %v4370_v43, %v1962_v45  ;;  %v2051_v48 = vadd.f32 %v4371_v44, %v2050_v46  ;;  %v4905_v49 = vpop.f32.mrb[13].mxu0  ;;  %v4925_v50 = vpop.f32.mrb[13].mxu1 }
 0x3c1   : > { %v1965_v51 = vpop.f32.mrb[14].mxu0  ;;  %v2053_v53 = vpop.f32.mrb[14].mxu1 }
 0x3c2   : > { %v2506_v54 = vpack.c.bf16 %v1963_v47, %v1963_v47  ;;  %v2507_v55 = vpack.c.bf16 %v2051_v48, %v2051_v48  ;;  %v4906_v56 = vpop.f32.mrb[15].mxu0  ;;  %v4926_v57 = vpop.f32.mrb[15].mxu1 }
 0x3c4   : > { %v2605_v60 = vsel %vm2508_vm2, %v2506_v54, 0  ;;  %v2651_v61 = vsel %vm2508_vm2, %v2507_v55, 0 }
 0x3c5   : > { %5020 = vmatpush3.bf16.xpose.msra.mxu0 %v2605_v60  ;;  %5026 = vmatpush3.bf16.xpose.msra.mxu1 %v2651_v61 }
 0x3c6   : > { %5031 = vmatprep.subr.bf16.mxu0 %v5514_v22  ;;  %5037 = vmatprep.subr.bf16.mxu1 %v5514_v22 }
 0x3cc   : > { %5022 = vmatmul.mubr.msk.bf16.vlgmr.msra.gmra.mrb[28].mxu0 %vm2508_vm2, %v2502_v0  ;;  %5028 = vmatmul.mubr.msk.bf16.vlgmr.msra.gmra.mrb[28].mxu1 %vm2508_vm2, %v2503_v1 }
 0x3cd   : > { %5033 = vmatprep.mubr.msk.bf16.mxu0 %vm5515_vm1, %v5514_v22  ;;  %5039 = vmatprep.mubr.msk.bf16.mxu1 %vm5515_vm1, %v5514_v22 }
 0x3df   : > { %v2230_v4 = vpop.f32.mrb[16].mxu0  ;;  %v2318_v5 = vpop.f32.mrb[16].mxu1 }
 0x3e0   : > { %v2231_v6 = vadd.f32 %v4404_v2, %v2230_v4  ;;  %v2319_v7 = vadd.f32 %v4405_v3, %v2318_v5  ;;  %v4945_v8 = vpop.f32.mrb[17].mxu0  ;;  %v4965_v9 = vpop.f32.mrb[17].mxu1 }
 0x3e1   : > { %v2233_v10 = vpop.f32.mrb[18].mxu0  ;;  %v2321_v11 = vpop.f32.mrb[18].mxu1 }
 0x3e2   : > { %v2751_v12 = vpack.c.bf16 %v2231_v6, %v2231_v6  ;;  %v2752_v13 = vpack.c.bf16 %v2319_v7, %v2319_v7  ;;  %v4946_v14 = vpop.f32.mrb[19].mxu0  ;;  %v4966_v15 = vpop.f32.mrb[19].mxu1 }
 0x3e4   : > { %v2760_v52 = vsel %vm2758_vm3, %v2751_v12, 0  ;;  %v2806_v16 = vsel %vm2758_vm3, %v2752_v13, 0 }
 0x3e5   : > { %5032 = vmatpush3.bf16.msra.mxu0 %v2760_v52  ;;  %5038 = vmatpush3.bf16.msra.mxu1 %v2806_v16 }
 0x3e6   : > { %5043 = vmatprep.subr.bf16.mxu0 %v5514_v22  ;;  %5049 = vmatprep.subr.bf16.mxu1 %v5514_v22 }
 0x3ff   : > { %v2406_v19 = vpop.f32.mrb[20].mxu0  ;;  %v2494_v20 = vpop.f32.mrb[20].mxu1 }
 0x400   : > { %v2407_v21 = vadd.f32 %v4406_v17, %v2406_v19  ;;  %v2495_v23 = vadd.f32 %v4407_v18, %v2494_v20  ;;  %v4985_v24 = vpop.f32.mrb[21].mxu0  ;;  %v5005_v25 = vpop.f32.mrb[21].mxu1 }
 0x401   : > { %v2409_v26 = vpop.f32.mrb[22].mxu0  ;;  %v2497_v27 = vpop.f32.mrb[22].mxu1 }
 0x402   : > { %v2753_v28 = vpack.c.bf16 %v2407_v21, %v2407_v21  ;;  %v2754_v29 = vpack.c.bf16 %v2495_v23, %v2495_v23  ;;  %v4986_v30 = vpop.f32.mrb[23].mxu0  ;;  %v5006_v31 = vpop.f32.mrb[23].mxu1 }
 0x404   : > { %v6127_v32 = vsel %vm2758_vm3, %v2753_v28, 0  ;;  %v6130_v33 = vsel %vm2758_vm3, %v2754_v29, 0 }
 0x47f   : > { %v2549_v34 = vpop.f32.mrb[24].mxu0  ;;  %v2595_v35 = vpop.f32.mrb[24].mxu1 }
 0x480   : > { %v2693_v37 = vmul.f32 0.17677669, %v2549_v34  ;;  %v2694_v38 = vmul.f32 0.17677669, %v2595_v35  ;;  %v5011_v39 = vpop.f32.mrb[25].mxu0  ;;  %v5017_v40 = vpop.f32.mrb[25].mxu1 }
 0x481   : > { %v2552_v41 = vpop.f32.mrb[26].mxu0  ;;  %v2598_v42 = vpop.f32.mrb[26].mxu1  ;;  %v5292_v39 = vld [vmem:[%s5779_s6 + $0x18] sm:$0xff]  }
 0x482   : > { %v5012_v43 = vpop.f32.mrb[27].mxu0  ;;  %v5018_v44 = vpop.f32.mrb[27].mxu1  ;;  %v2698_v45 = vadd.f32 %v2697_v36, %v2693_v37  ;;  %v2699_v47 = vadd.f32 %v2697_v36, %v2694_v38  ;;  %v5291_v38 = vld [vmem:[%s5779_s6 + $0x10] sm:$0xff]   ;;  %v5293_v41 = vld [vmem:[%s5779_s6 + $0x20] sm:$0xff]  }
 0x484   : > { %v2703_v46 = vsel %vm2702_vm4, %v2698_v45, -inf  ;;  %v2706_v48 = vsel %vm2702_vm4, %v2699_v47, -inf }
 0x485   : > { %2704 = vmax.xlane.f32.xlu1 %v2703_v46 }
 0x489   : > { %2707 = vmax.xlane.f32.xlu1 %v2706_v48  ;;  %v5295_v48 = vld [vmem:[%s5779_s6 + $0x28] sm:$0xff]  }
 0x49f   : > { %v2641_v49 = vpop.f32.mrb[28].mxu0  ;;  %v2687_v50 = vpop.f32.mrb[28].mxu1 }
 0x4a0   : > { %v2695_v51 = vmul.f32 0.17677669, %v2641_v49  ;;  %v2696_v53 = vmul.f32 0.17677669, %v2687_v50  ;;  %v5023_v54 = vpop.f32.mrb[29].mxu0  ;;  %v5029_v55 = vpop.f32.mrb[29].mxu1 }
 0x4a1   : > { %v2644_v56 = vpop.f32.mrb[30].mxu0  ;;  %v2690_v57 = vpop.f32.mrb[30].mxu1  ;;  %v5296_v54 = vld [vmem:[%s5779_s6 + $0x38] sm:$0xff]  }
 0x4a2   : > { %v5024_v58 = vpop.f32.mrb[31].mxu0  ;;  %v5030_v59 = vpop.f32.mrb[31].mxu1  ;;  %v2701_v60 = vadd.f32 %v2697_v36, %v2696_v53  ;;  %v2700_v61 = vadd.f32 %v2697_v36, %v2695_v51  ;;  %v5289_v36 = vld [vmem:[%s5779_s6] sm:$0xff]  }
 0x4a4   : > { %v2712_v62 = vsel %vm2702_vm4, %v2701_v60, -inf  ;;  %v2709_v63 = vsel %vm2702_vm4, %v2700_v61, -inf }
 0x4a5   : > { %2713 = vmax.xlane.f32.xlu1 %v2712_v62  ;;  %2710 = vmax.xlane.f32.xlu0 %v2709_v63 }
 0x512   : > { %v2705_v0 = vpop.xlane.xlu1 %2704 }
 0x513   : > { %v2715_v1 = vsub.f32 %v2698_v45, %v2705_v0 }
 0x515   : > { %v2719_v2 = vmul.f32 1.442695, %v2715_v1 }
 0x516   : > { %v2708_v3 = vpop.xlane.xlu1 %2707 }
 0x517   : > { %5379 = vpow2.f32 %v2719_v2  ;;  %v2716_v4 = vsub.f32 %v2699_v47, %v2708_v3  ;;  %v5294_v47 = vld [vmem:[%s5779_s6 + $0x30] sm:$0xff]  }
 0x519   : > { %v2721_v5 = vmul.f32 1.442695, %v2716_v4 }
 0x51b   : > { %5381 = vpow2.f32 %v2721_v5 }
 0x521   : > { %v5380_v6 = vpop.eup %5379 }
 0x522   : > { %v2727_v7 = vsel %vm2702_vm4, %v5380_v6, 0.0 }
 0x523   : > { %2728 = vadd.xlane.f32.xlu0 %v2727_v7 }
 0x525   : > { %v5382_v8 = vpop.eup %5381 }
 0x526   : > { %v2730_v9 = vsel %vm2702_vm4, %v5382_v8, 0.0 }
 0x527   : > { %2731 = vadd.xlane.f32.xlu1 %v2730_v9 }
 0x532   : > { %v2714_v10 = vpop.xlane.xlu1 %2713  ;;  %v2711_v11 = vpop.xlane.xlu0 %2710 }
 0x533   : > { %v2718_v12 = vsub.f32 %v2701_v60, %v2714_v10  ;;  %v2717_v13 = vsub.f32 %v2700_v61, %v2711_v11 }
 0x535   : > { %v2725_v14 = vmul.f32 1.442695, %v2718_v12  ;;  %v2723_v15 = vmul.f32 1.442695, %v2717_v13 }
 0x537   : > { %5383 = vpow2.f32 %v2725_v14 }
 0x538   : > { %5385 = vpow2.f32 %v2723_v15 }
 0x541   : > { %v5384_v52 = vpop.eup %5383 }
 0x542   : > { %v5386_v16 = vpop.eup %5385  ;;  %v2736_v17 = vsel %vm2702_vm4, %v5384_v52, 0.0 }
 0x543   : > { %2737 = vadd.xlane.f32.xlu1 %v2736_v17  ;;  %v2733_v18 = vsel %vm2702_vm4, %v5386_v16, 0.0 }
 0x544   : > { %2734 = vadd.xlane.f32.xlu0 %v2733_v18  ;;  %v4460_v18 = vld [vmem:[%s6469_s24] ss:$0 sm:$0xff] }
 0x5b0   : > { %v2729_v19 = vpop.xlane.xlu0 %2728 }
 0x5b1   : > { %5387 = vrcp.f32 %v2729_v19  ;;  %v5405_v19 = vld [vmem:[#allocation2] sm:$0xff] }
 0x5b4   : > { %v2732_v20 = vpop.xlane.xlu1 %2731 }
 0x5b5   : > { %5389 = vrcp.f32 %v2732_v20 }
 0x5bb   : > { %v5388_v21 = vpop.eup %5387 }
 0x5bc   : > { %v2740_v23 = vmul.f32 %v5388_v21, %v5380_v6 }
 0x5be   : > { %v2747_v24 = vpack.c.bf16 %v2740_v23, %v2740_v23  ;;  %v5297_v23 = vld [vmem:[%s5796_s7] ss:$16 sps:$4 sm:$0xff]  }
 0x5bf   : > { %v5390_v25 = vpop.eup %5389 }
 0x5c0   : > { %v2742_v26 = vmul.f32 %v5390_v25, %v5382_v8  ;;  %5034 = vmatmul.mubr.msk.bf16.vlgmr.msra.gmra.mrb[32].mxu0 %vm2702_vm4, %v2747_v24  ;;  %v5299_v24 = vld [vmem:[%s5796_s7 + $0x4] ss:$16 sps:$4 sm:$0xff]   ;;  %v5300_v25 = vld [vmem:[%s5796_s7 + $0x8] ss:$16 sps:$4 sm:$0xff]  }
 0x5c1   : > { %5044 = vmatpush3.bf16.msra.mxu0 %v6127_v32  ;;  %5045 = vmatprep.mubr.msk.bf16.mxu0 %vm5515_vm1, %v5514_v22 }
 0x5c2   : > { %v2748_v27 = vpack.c.bf16 %v2742_v26, %v2742_v26  ;;  %5055 = vmatprep.subr.bf16.mxu0 %v5514_v22  ;;  %v5302_v26 = vld [vmem:[%s5796_s7 + $0xc] ss:$16 sps:$4 sm:$0xff]  }
 0x5c4   : > { %5040 = vmatmul.mubr.msk.bf16.vlgmr.msra.gmra.mrb[32].mxu1 %vm2702_vm4, %v2748_v27  ;;  %v5305_v27 = vld [vmem:[%s5796_s7 + $0x24] ss:$16 sps:$4 sm:$0xff]  }
 0x5c5   : > { %5050 = vmatpush3.bf16.msra.mxu1 %v6130_v33  ;;  %5051 = vmatprep.mubr.msk.bf16.mxu1 %vm5515_vm1, %v5514_v22  ;;  %v5290_v33 = vld [vmem:[%s5779_s6 + $0x8] sm:$0xff]  }
 0x5c6   : > { %5063 = vmatprep.subr.bf16.mxu1 %v5514_v22 }
 0x5d0   : > { %v2738_v28 = vpop.xlane.xlu1 %2737 }
 0x5d1   : > { %5391 = vrcp.f32 %v2738_v28  ;;  %v2735_v29 = vpop.xlane.xlu0 %2734  ;;  %v5308_v28 = vld [vmem:[%s5796_s7 + $0x2c] ss:$16 sps:$4 sm:$0xff]  }
 0x5d2   : > { %5393 = vrcp.f32 %v2735_v29  ;;  %v5303_v29 = vld [vmem:[%s5796_s7 + $0x20] ss:$16 sps:$4 sm:$0xff]  }
 0x5db   : > { %v5392_v30 = vpop.eup %5391 }
 0x5dc   : > { %v5394_v31 = vpop.eup %5393  ;;  %v2746_v32 = vmul.f32 %v5392_v30, %v5384_v52  ;;  %v5306_v30 = vld [vmem:[%s5796_s7 + $0x28] ss:$16 sps:$4 sm:$0xff]  }
 0x5dd   : > { %v2744_v34 = vmul.f32 %v5394_v31, %v5386_v16  ;;  %v5311_v31 = vld [vmem:[%s5796_s7 + $0x44] ss:$16 sps:$4 sm:$0xff]  }
 0x5de   : > { %v2750_v35 = vpack.c.bf16 %v2746_v32, %v2746_v32  ;;  %v5314_v32 = vld [vmem:[%s5796_s7 + $0x4c] ss:$16 sps:$4 sm:$0xff]  }
 0x5df   : > { %v2749_v37 = vpack.c.bf16 %v2744_v34, %v2744_v34  ;;  %v5309_v34 = vld [vmem:[%s5796_s7 + $0x40] ss:$16 sps:$4 sm:$0xff]  }
 0x5e0   : > { %5052 = vmatmul.mubr.msk.bf16.vlgmr.msra.gmra.mrb[36].mxu1 %vm2702_vm4, %v2750_v35  ;;  %v5312_v35 = vld [vmem:[%s5796_s7 + $0x48] ss:$16 sps:$4 sm:$0xff]  }
 0x5e1   : > { %5046 = vmatmul.mubr.msk.bf16.vlgmr.msra.gmra.mrb[36].mxu0 %vm2702_vm4, %v2749_v37  ;;  %5067 = vmatprep.mubr.msk.bf16.mxu1 %vm5515_vm1, %v5514_v22 }
 0x5e2   : > { %5056 = vmatpush3.bf16.msra.mxu0 %v5289_v36  ;;  %5059 = vmatprep.mubr.msk.bf16.mxu0 %vm5515_vm1, %v5514_v22 }
 0x5e3   : > { %5057 = vmatprep.subr.bf16.mxu0 %v5514_v22  ;;  %5064 = vmatpush3.bf16.msra.mxu1 %v5291_v38 }
 0x5e4   : > { %5065 = vmatprep.subr.bf16.mxu1 %v5514_v22 }
 0x5e6   : > { %5058 = vmatpush3.bf16.msra.mxu0 %v5290_v33 }
 0x5e7   : > { %5071 = vmatprep.subr.bf16.mxu0 %v5514_v22  ;;  %5066 = vmatpush3.bf16.msra.mxu1 %v5292_v39  ;;  %v5317_v39 = vld [vmem:[%s5796_s7 + $0x64] ss:$16 sps:$4 sm:$0xff]  }
 0x5e8   : > { %5079 = vmatprep.subr.bf16.mxu1 %v5514_v22 }
 0x693   : > { %v2796_v40 = vpop.f32.mrb[32].mxu0 }
 0x694   : > { %v2940_v42 = vpack.c.bf16 %v2796_v40, %v2796_v40  ;;  %v5035_v43 = vpop.f32.mrb[33].mxu0  ;;  %v5320_v40 = vld [vmem:[%s5796_s7 + $0x6c] ss:$16 sps:$4 sm:$0xff]  }
 0x695   : > { %v2799_v44 = vpop.f32.mrb[34].mxu0  ;;  %v5323_v43 = vld [vmem:[%s5796_s7 + $0x84] ss:$16 sps:$4 sm:$0xff]  }
 0x696   : > { %v5036_v45 = vpop.f32.mrb[35].mxu0  ;;  %5060 = vmatmul.mubr.msk.bf16.vlgmr.msra.gmra.mrb[40].mxu0 %vm2508_vm2, %v2940_v42  ;;  %v5318_v42 = vld [vmem:[%s5796_s7 + $0x68] ss:$16 sps:$4 sm:$0xff]   ;;  %v5326_v44 = vld [vmem:[%s5796_s7 + $0x8c] ss:$16 sps:$4 sm:$0xff]  }
 0x697   : > { %v2842_v46 = vpop.f32.mrb[32].mxu1  ;;  %5072 = vmatpush3.bf16.msra.mxu0 %v5293_v41  ;;  %5075 = vmatprep.mubr.msk.bf16.mxu0 %vm5515_vm1, %v5514_v22  ;;  %v5315_v41 = vld [vmem:[%s5796_s7 + $0x60] ss:$16 sps:$4 sm:$0xff]  }
 0x698   : > { %v2941_v49 = vpack.c.bf16 %v2842_v46, %v2842_v46  ;;  %v5041_v50 = vpop.f32.mrb[33].mxu1  ;;  %5073 = vmatprep.subr.bf16.mxu0 %v5514_v22  ;;  %v5321_v45 = vld [vmem:[%s5796_s7 + $0x80] ss:$16 sps:$4 sm:$0xff]   ;;  %v5324_v46 = vld [vmem:[%s5796_s7 + $0x88] ss:$16 sps:$4 sm:$0xff]  }
 0x699   : > { %v2845_v51 = vpop.f32.mrb[34].mxu1  ;;  %v5330_v50 = vld [vmem:[%s5796_s7 + $0xa8] ss:$16 sps:$4 sm:$0xff]  }
 0x69a   : > { %v5042_v53 = vpop.f32.mrb[35].mxu1  ;;  %5068 = vmatmul.mubr.msk.bf16.vlgmr.msra.gmra.mrb[40].mxu1 %vm2508_vm2, %v2941_v49  ;;  %v5327_v49 = vld [vmem:[%s5796_s7 + $0xa0] ss:$16 sps:$4 sm:$0xff]   ;;  %v5335_v51 = vld [vmem:[%s5796_s7 + $0xc4] ss:$16 sps:$4 sm:$0xff]  }
 0x69b   : > { %5080 = vmatpush3.bf16.msra.mxu1 %v5294_v47  ;;  %5074 = vmatpush3.bf16.msra.mxu0 %v5295_v48  ;;  %v5329_v47 = vld [vmem:[%s5796_s7 + $0xa4] ss:$16 sps:$4 sm:$0xff]   ;;  %v5332_v48 = vld [vmem:[%s5796_s7 + $0xac] ss:$16 sps:$4 sm:$0xff]  }
 0x69c   : > { %5081 = vmatprep.subr.bf16.mxu1 %v5514_v22  ;;  %5083 = vmatprep.mubr.msk.bf16.mxu1 %vm5515_vm1, %v5514_v22  ;;  %v5338_v53 = vld [vmem:[%s5796_s7 + $0xcc] ss:$16 sps:$4 sm:$0xff]  }
 0x69d   : > { %3434 = vmatprep.subr.bf16.mxu0 %v5299_v24  ;;  %v5362_v24 = vld [vmem:[%s5805_s9 + $0xe0] sm:$0xff]  }
 0x69f   : > { %5082 = vmatpush3.bf16.msra.mxu1 %v5296_v54  ;;  %v5333_v54 = vld [vmem:[%s5796_s7 + $0xc0] ss:$16 sps:$4 sm:$0xff]  }
 0x6a0   : > { %3475 = vmatprep.subr.bf16.mxu1 %v5302_v26  ;;  %v5364_v26 = vld [vmem:[%s5805_s9 + $0xa0] sm:$0xff]  }
 0x6b3   : > { %v2934_v55 = vpop.f32.mrb[36].mxu1 }
 0x6b4   : > { %v2888_v56 = vpop.f32.mrb[36].mxu0  ;;  %v2943_v57 = vpack.c.bf16 %v2934_v55, %v2934_v55  ;;  %v5053_v58 = vpop.f32.mrb[37].mxu1  ;;  %v5336_v55 = vld [vmem:[%s5796_s7 + $0xc8] ss:$16 sps:$4 sm:$0xff]  }
 0x6b5   : > { %v2942_v59 = vpack.c.bf16 %v2888_v56, %v2888_v56  ;;  %v5047_v60 = vpop.f32.mrb[37].mxu0  ;;  %v2937_v61 = vpop.f32.mrb[38].mxu1  ;;  %v5339_v56 = vld [vmem:[%s5796_s7 + $0xe0] ss:$16 sps:$4 sm:$0xff]   ;;  %v5342_v58 = vld [vmem:[%s5796_s7 + $0xe8] ss:$16 sps:$4 sm:$0xff]  }
 0x6b6   : > { %v2891_v62 = vpop.f32.mrb[38].mxu0  ;;  %v5054_v63 = vpop.f32.mrb[39].mxu1  ;;  %5084 = vmatmul.mubr.msk.bf16.vlgmr.msra.gmra.mrb[44].mxu1 %vm2508_vm2, %v2943_v57  ;;  %v5341_v57 = vld [vmem:[%s5796_s7 + $0xe4] ss:$16 sps:$4 sm:$0xff]   ;;  %v5516_v60 = vmov 0  }
 0x6b7   : > { %v5048_v0 = vpop.f32.mrb[39].mxu0  ;;  %5076 = vmatmul.mubr.msk.bf16.vlgmr.msra.gmra.mrb[44].mxu0 %vm2508_vm2, %v2942_v59  ;;  %3476 = vmatpush1.bf16.msra.mxu1 %v5300_v25  ;;  %v5344_v59 = vld [vmem:[%s5796_s7 + $0xec] ss:$16 sps:$4 sm:$0xff]   ;;  %s6471_s7 = scalar_lea.vmem %s6470_s3, %s5723_s5  ;;  %v5363_v25 = vld [vmem:[%s5805_s9 + $0x20] sm:$0xff]  }
 0x6b8   : > { %3435 = vmatpush1.bf16.msra.mxu0 %v5297_v23  ;;  %3477 = vmatprep.subr.bf16.mxu1 %v5308_v28  ;;  %v5361_v23 = vld [vmem:[%s5805_s9 + $0x60] sm:$0xff]   ;;  %v5366_v28 = vld [vmem:[%s5805_s9 + $0xe8] sm:$0xff]  }
 0x6b9   : > { %3436 = vmatprep.subr.bf16.mxu0 %v5305_v27  ;;  %3466 = vmatprep.mubr.bf16.mxu0 %v5516_v60  ;;  %v5365_v27 = vld [vmem:[%s5805_s9 + $0x68] sm:$0xff]  }
 0x6ba   : > { %3507 = vmatprep.mubr.bf16.mxu1 %v5516_v60 }
 0x6bb   : > { %3478 = vmatpush1.bf16.msra.mxu1 %v5306_v30  ;;  %v5368_v30 = vld [vmem:[%s5805_s9 + $0xa8] sm:$0xff]  }
 0x6bc   : > { %3437 = vmatpush1.bf16.msra.mxu0 %v5303_v29  ;;  %3479 = vmatprep.subr.bf16.mxu1 %v5314_v32  ;;  %v5367_v29 = vld [vmem:[%s5805_s9 + $0x28] sm:$0xff]   ;;  %v5370_v32 = vld [vmem:[%s5805_s9 + $0xf0] sm:$0xff]  }
 0x6bd   : > { %3438 = vmatprep.subr.bf16.mxu0 %v5311_v31  ;;  %v5369_v31 = vld [vmem:[%s5805_s9 + $0x70] sm:$0xff]  }
 0x6bf   : > { %3480 = vmatpush1.bf16.msra.mxu1 %v5312_v35  ;;  %v5372_v35 = vld [vmem:[%s5805_s9 + $0xb0] sm:$0xff]  }
 0x6c0   : > { %3439 = vmatpush1.bf16.msra.mxu0 %v5309_v34  ;;  %3481 = vmatprep.subr.bf16.mxu1 %v5320_v40  ;;  %v5371_v34 = vld [vmem:[%s5805_s9 + $0x30] sm:$0xff]  }
 0x6c1   : > { %3440 = vmatprep.subr.bf16.mxu0 %v5317_v39  ;;  %v3254_v39 = vlaneseq }
 0x6c3   : > { %3482 = vmatpush1.bf16.msra.mxu1 %v5318_v42  ;;  %v3255_v40 = vshrl.u32 %v3254_v39, 7 }
 0x6c4   : > { %3441 = vmatpush1.bf16.msra.mxu0 %v5315_v41  ;;  %3483 = vmatprep.subr.bf16.mxu1 %v5326_v44 }
 0x6c5   : > { %3442 = vmatprep.subr.bf16.mxu0 %v5323_v43  ;;  %v3256_v41 = vsub.s32 0, %v3255_v40  ;;  %v3264_v42 = vsub.s32 2, %v3255_v40  ;;  %v3252_v43 = vld [vmem:[%s1008_s27] sm:$0xf]  ;;  %v3260_v44 = vsub.s32 1, %v3255_v40 }
 0x6c7   : > { %3484 = vmatpush1.bf16.msra.mxu1 %v5324_v46  ;;  %v3257_v46 = vrot.slane %v3252_v43, %v3256_v41 }
 0x6c8   : > { %3443 = vmatpush1.bf16.msra.mxu0 %v5321_v45  ;;  %3485 = vmatprep.subr.bf16.mxu1 %v5332_v48  ;;  %v3268_v45 = vsub.s32 3, %v3255_v40  ;;  %v3261_v48 = vrot.slane %v3252_v43, %v3260_v44 }
 0x6c9   : > { %3444 = vmatprep.subr.bf16.mxu0 %v5329_v47  ;;  %v3265_v47 = vrot.slane %v3252_v43, %v3264_v42 }
 0x6cb   : > { %3486 = vmatpush1.bf16.msra.mxu1 %v5330_v50 }
 0x6cc   : > { %3445 = vmatpush1.bf16.msra.mxu0 %v5327_v49  ;;  %3487 = vmatprep.subr.bf16.mxu1 %v5338_v53  ;;  %v3269_v49 = vrot.slane %v3252_v43, %v3268_v45 }
 0x6cd   : > { %3446 = vmatprep.subr.bf16.mxu0 %v5335_v51 }
 0x6cf   : > { %3488 = vmatpush1.bf16.msra.mxu1 %v5336_v55 }
 0x6d0   : > { %3447 = vmatpush1.bf16.msra.mxu0 %v5333_v54  ;;  %3489 = vmatprep.subr.bf16.mxu1 %v5344_v59 }
 0x6d1   : > { %3448 = vmatprep.subr.bf16.mxu0 %v5341_v57 }
 0x6d3   : > { %3490 = vmatpush1.bf16.msra.mxu1 %v5342_v58 }
 0x6d4   : > { %3449 = vmatpush1.bf16.msra.mxu0 %v5339_v56 }
 0x769   : > { %v3009_v1 = vpop.f32.mrb[40].mxu0 }
 0x76a   : > { %v5061_v2 = vpop.f32.mrb[41].mxu0 }
 0x76b   : > { %v3012_v3 = vpop.f32.mrb[42].mxu0 }
 0x76c   : > { %v5062_v4 = vpop.f32.mrb[43].mxu0  ;;  %v4462_v3 = vld [vmem:[%s6472_s12] ss:$0 sm:$0xff] }
 0x76d   : > { %v3064_v22 = vpop.f32.mrb[40].mxu1 }
 0x76e   : > { %v3180_v5 = vadd.f32 %v3064_v22, %v3009_v1  ;;  %v5069_v6 = vpop.f32.mrb[41].mxu1  ;;  %v4461_v1 = vld [vmem:[%s6471_s7] ss:$0 sm:$0xff] }
 0x76f   : > { %v3067_v7 = vpop.f32.mrb[42].mxu1  ;;  %v5345_v6 = vld [vmem:[%s5805_s9 + $0x40] sm:$0xff]  }
 0x770   : > { %v5070_v8 = vpop.f32.mrb[43].mxu1  ;;  %v5346_v7 = vld [vmem:[%s5805_s9 + $0xc0] sm:$0xff]   ;;  %4694 = vmatprep.subr.bf16.mxu0 %v5345_v6 }
 0x771   : > { %v5347_v8 = vld [vmem:[%s5805_s9] sm:$0xff]   ;;  %4716 = vmatprep.subr.bf16.mxu1 %v5346_v7 }
 0x789   : > { %v3174_v9 = vpop.f32.mrb[44].mxu1 }
 0x78a   : > { %v3119_v10 = vpop.f32.mrb[44].mxu0  ;;  %v5085_v11 = vpop.f32.mrb[45].mxu1 }
 0x78b   : > { %v3181_v12 = vadd.f32 %v3180_v5, %v3119_v10  ;;  %v5077_v13 = vpop.f32.mrb[45].mxu0  ;;  %v3177_v14 = vpop.f32.mrb[46].mxu1  ;;  %v5349_v10 = vld [vmem:[%s5805_s9 + $0x48] sm:$0xff]  }
 0x78c   : > { %v3122_v15 = vpop.f32.mrb[46].mxu0  ;;  %v5086_v52 = vpop.f32.mrb[47].mxu1  ;;  %v5350_v11 = vld [vmem:[%s5805_s9 + $0xc8] sm:$0xff]   ;;  %v5353_v14 = vld [vmem:[%s5805_s9 + $0x50] sm:$0xff]  }
 0x78d   : > { %v3182_v16 = vadd.f32 %v3181_v12, %v3174_v9  ;;  %v5078_v17 = vpop.f32.mrb[47].mxu0  ;;  %v5348_v9 = vld [vmem:[%s5805_s9 + $0x80] sm:$0xff]   ;;  %v5351_v12 = vld [vmem:[%s5805_s9 + $0x8] sm:$0xff]   ;;  %v5354_v15 = vld [vmem:[%s5805_s9 + $0xd0] sm:$0xff]  }
 0x78e   : > { %v5352_v13 = vld [vmem:[%s5805_s9 + $0x88] sm:$0xff]   ;;  %v5355_v52 = vld [vmem:[%s5805_s9 + $0x10] sm:$0xff]   ;;  %v5357_v17 = vld [vmem:[%s5805_s9 + $0x58] sm:$0xff]  }
 0x78f   : > { %v3183_v20 = vadd.f32 %v5405_v19, %v3182_v16  ;;  %v5356_v16 = vld [vmem:[%s5805_s9 + $0x90] sm:$0xff]   ;;  %v5359_v19 = vld [vmem:[%s5805_s9 + $0x18] sm:$0xff]  }
 0x791   : > { %v6186_v21 = vadd.f32 %v4460_v18, %v3183_v20  ;;  %v5358_v18 = vld [vmem:[%s5805_s9 + $0xd8] sm:$0xff]  }
 0x792   : > { %v5360_v20 = vld [vmem:[%s5805_s9 + $0x98] sm:$0xff]  }
 0x793   : > { %3194 = vadd.xlane.f32.xlu0 %v6186_v21 }
 0x820   : > { %v3195_v36 = vpop.xlane.xlu0 %3194 }
 0x821   : > { %v3196_v37 = vmul.f32 0.0078125, %v3195_v36  ;;  %v5373_v36 = vld [vmem:[%s5805_s9 + $0x78] sm:$0xff]  }
 0x823   : > { %v3197_v33 = vsub.f32 %v6186_v21, %v3196_v37  ;;  %v5374_v37 = vld [vmem:[%s5805_s9 + $0xf8] sm:$0xff]  }
 0x825   : > { %v3198_v38 = vmul.f32 %v3197_v33, %v3197_v33 }
 0x827   : > { %3199 = vadd.xlane.f32.xlu1 %v3198_v38  ;;  %v5376_v38 = vld [vmem:[%s5805_s9 + $0xb8] sm:$0xff]  }
 0x8b4   : > { %v3200_v61 = vpop.xlane.xlu1 %3199 }
 0x8b5   : > { %v3201_v62 = vmul.f32 0.0078125, %v3200_v61 }
 0x8b7   : > { %v3202_v63 = vadd.f32 1e-05, %v3201_v62 }
 0x8b9   : > { %5395 = vrsqrt.f32 %v3202_v63 }
 0x8c3   : > { %v5396_v0 = vpop.eup %5395 }
 0x8c4   : > { %v3204_v2 = vmul.f32 %v5396_v0, %v3197_v33  ;;  %v5375_v33 = vld [vmem:[%s5805_s9 + $0x38] sm:$0xff]   ;;  %s6477_s9 = sld [smem:[#allocation38_spill]] (!%p4528_p1) }
 0x8c6   : > { %v3211_v4 = vmul.f32 %v4461_v1, %v3204_v2 }
 0x8c8   : > { %v3218_v22 = vadd.f32 %v4462_v3, %v3211_v4 }
 0x8ca   : > { %v3251_v5 = vpack.c.bf16 %v3218_v22, %v3218_v22 }
 0x8cc   : > { %3467 = vmatmul.mubr.bf16.vlgmr.msra.gmra.mrb[48].mxu0 %v3251_v5  ;;  %3508 = vmatmul.mubr.bf16.vlgmr.msra.gmra.mrb[48].mxu1 %v3251_v5 }
 0x8cd   : > { %4695 = vmatpush3.bf16.msra.mxu0 %v5347_v8  ;;  %4717 = vmatpush3.bf16.msra.mxu1 %v5348_v9 }
 0x8ce   : > { %4696 = vmatprep.subr.bf16.mxu0 %v5349_v10  ;;  %4718 = vmatprep.subr.bf16.mxu1 %v5350_v11 }
 0x8d1   : > { %4697 = vmatpush3.bf16.msra.mxu0 %v5351_v12  ;;  %4719 = vmatpush3.bf16.msra.mxu1 %v5352_v13 }
 0x8d2   : > { %4698 = vmatprep.subr.bf16.mxu0 %v5353_v14  ;;  %4720 = vmatprep.subr.bf16.mxu1 %v5354_v15 }
 0x8d5   : > { %4699 = vmatpush3.bf16.msra.mxu0 %v5355_v52  ;;  %4721 = vmatpush3.bf16.msra.mxu1 %v5356_v16 }
 0x8d6   : > { %4700 = vmatprep.subr.bf16.mxu0 %v5357_v17  ;;  %4722 = vmatprep.subr.bf16.mxu1 %v5358_v18 }
 0x8d9   : > { %4701 = vmatpush3.bf16.msra.mxu0 %v5359_v19  ;;  %4723 = vmatpush3.bf16.msra.mxu1 %v5360_v20 }
 0x8da   : > { %4702 = vmatprep.subr.bf16.mxu0 %v5361_v23  ;;  %4724 = vmatprep.subr.bf16.mxu1 %v5362_v24 }
 0x8dd   : > { %4703 = vmatpush3.bf16.msra.mxu0 %v5363_v25  ;;  %4725 = vmatpush3.bf16.msra.mxu1 %v5364_v26 }
 0x8de   : > { %4704 = vmatprep.subr.bf16.mxu0 %v5365_v27  ;;  %4726 = vmatprep.subr.bf16.mxu1 %v5366_v28 }
 0x8e1   : > { %4705 = vmatpush3.bf16.msra.mxu0 %v5367_v29  ;;  %4727 = vmatpush3.bf16.msra.mxu1 %v5368_v30 }
 0x8e2   : > { %4706 = vmatprep.subr.bf16.mxu0 %v5369_v31  ;;  %4728 = vmatprep.subr.bf16.mxu1 %v5370_v32 }
 0x8e5   : > { %4707 = vmatpush3.bf16.msra.mxu0 %v5371_v34  ;;  %4729 = vmatpush3.bf16.msra.mxu1 %v5372_v35 }
 0x8e6   : > { %4708 = vmatprep.subr.bf16.mxu0 %v5373_v36  ;;  %4730 = vmatprep.subr.bf16.mxu1 %v5374_v37 }
 0x8e9   : > { %4709 = vmatpush3.bf16.msra.mxu0 %v5375_v33  ;;  %4731 = vmatpush3.bf16.msra.mxu1 %v5376_v38 }
 0x99f   : > { %v3468_v50 = vpop.f32.mrb[48].mxu0  ;;  %v3509_v51 = vpop.f32.mrb[48].mxu1 }
 0x9a0   : > { %v3469_v53 = vadd.f32 %v3468_v50, %v3257_v46  ;;  %v3510_v54 = vadd.f32 %v3509_v51, %v3265_v47  ;;  %v3470_v55 = vpop.f32.mrb[49].mxu0  ;;  %v3511_v56 = vpop.f32.mrb[49].mxu1  ;;  %v4527_v50 = vld [vmem:[%s1016_s15] ss:$0 sm:$0xff] }
 0x9a1   : > { %v3471_v57 = vadd.f32 %v3470_v55, %v3261_v48  ;;  %v3512_v58 = vadd.f32 %v3511_v56, %v3269_v49  ;;  %v3472_v59 = vpop.f32.mrb[50].mxu0  ;;  %v3513_v60 = vpop.f32.mrb[50].mxu1  ;;  %v5517_v55 = vmov (!%p4528_p1), 0.0   ;;  %v5407_v56 = vld [vmem:[%s6476_s21 + $0x8] sm:$0xff] (!%p4528_p1)  }
 0x9a2   : > { %v3520_v61 = vmul.f32 0.044715, %v3469_v53  ;;  %v3522_v62 = vmul.f32 0.044715, %v3510_v54  ;;  %v3473_v63 = vpop.f32.mrb[51].mxu0  ;;  %v3514_v0 = vpop.f32.mrb[51].mxu1  ;;  %5087 = vmatprep.subr.bf16.mxu0 (!%p4528_p1), %v5517_v55 }
 0x9a3   : > { %v3521_v1 = vmul.f32 0.044715, %v3471_v57  ;;  %v3523_v2 = vmul.f32 0.044715, %v3512_v58  ;;  %v3516_v19 = vmul.f32 0.5, %v3469_v53  ;;  %v3517_v24 = vmul.f32 0.5, %v3471_v57 }
 0x9a4   : > { %v3524_v3 = vmul.f32 %v3520_v61, %v3469_v53  ;;  %v3526_v4 = vmul.f32 %v3522_v62, %v3510_v54  ;;  %v3519_v27 = vmul.f32 0.5, %v3512_v58  ;;  %v3518_v31 = vmul.f32 0.5, %v3510_v54  ;;  %v5408_v60 = vld [vmem:[%s6476_s21 + $0x10] sm:$0xff] (!%p4528_p1)   ;;  %v5409_v61 = vld [vmem:[%s6476_s21 + $0x18] sm:$0xff] (!%p4528_p1)   ;;  %v5410_v62 = vld [vmem:[%s6476_s21 + $0x20] sm:$0xff] (!%p4528_p1)  }
 0x9a5   : > { %v3525_v22 = vmul.f32 %v3521_v1, %v3471_v57  ;;  %v3527_v5 = vmul.f32 %v3523_v2, %v3512_v58  ;;  %v5411_v63 = vld [vmem:[%s6476_s21 + $0x28] sm:$0xff] (!%p4528_p1)   ;;  %v5412_v0 = vld [vmem:[%s6476_s21 + $0x30] sm:$0xff] (!%p4528_p1)   ;;  %v5413_v1 = vld [vmem:[%s6476_s21 + $0x38] sm:$0xff] (!%p4528_p1)  }
 0x9a6   : > { %v3528_v6 = vmul.f32 %v3524_v3, %v3469_v53  ;;  %v3530_v7 = vmul.f32 %v3526_v4, %v3510_v54 }
 0x9a7   : > { %v3529_v8 = vmul.f32 %v3525_v22, %v3471_v57  ;;  %v3531_v9 = vmul.f32 %v3527_v5, %v3512_v58  ;;  %v4529_v5 = vld [vmem:[%s6477_s9] ss:$0 sm:$0xff] (!%p4528_p1) }
 0x9a8   : > { %v3532_v10 = vadd.f32 %v3528_v6, %v3469_v53  ;;  %v3534_v11 = vadd.f32 %v3530_v7, %v3510_v54  ;;  %v5406_v54 = vld [vmem:[%s6475_s29] sm:$0xff] (!%p4528_p1)  }
 0x9a9   : > { %v3533_v12 = vadd.f32 %v3529_v8, %v3471_v57  ;;  %v3535_v13 = vadd.f32 %v3531_v9, %v3512_v58  ;;  %v4530_v7 = vld [vmem:[%s6478_s1] ss:$0 sm:$0xff] (!%p4528_p1) }
 0x9aa   : > { %v3536_v14 = vmul.f32 0.7978846, %v3532_v10  ;;  %v3538_v16 = vmul.f32 0.7978846, %v3534_v11 }
 0x9ab   : > { %v3537_v15 = vmul.f32 0.7978846, %v3533_v12  ;;  %v3539_v52 = vmul.f32 0.7978846, %v3535_v13 }
 0x9ac   : > { %5397 = vtanh.f32 %v3536_v14 }
 0x9ad   : > { %5399 = vtanh.f32 %v3537_v15 }
 0x9ae   : > { %5401 = vtanh.f32 %v3539_v52 }
 0x9af   : > { %5403 = vtanh.f32 %v3538_v16 }
 0x9b6   : > { %v5398_v17 = vpop.eup %5397 }
 0x9b7   : > { %v5400_v18 = vpop.eup %5399  ;;  %v3544_v20 = vadd.f32 1.0, %v5398_v17 }
 0x9b8   : > { %v5402_v23 = vpop.eup %5401  ;;  %v3545_v25 = vadd.f32 1.0, %v5400_v18 }
 0x9b9   : > { %v5404_v26 = vpop.eup %5403  ;;  %v3547_v28 = vadd.f32 1.0, %v5402_v23  ;;  %v3548_v29 = vmul.f32 %v3544_v20, %v3516_v19 }
 0x9ba   : > { %v3549_v30 = vmul.f32 %v3545_v25, %v3517_v24  ;;  %v3546_v32 = vadd.f32 1.0, %v5404_v26 }
 0x9bb   : > { %v3551_v34 = vmul.f32 %v3547_v28, %v3519_v27  ;;  %v3616_v33 = vpack.c.bf16 %v3548_v29, %v3548_v29 }
 0x9bc   : > { %v3617_v35 = vpack.c.bf16 %v3549_v30, %v3549_v30  ;;  %v3550_v36 = vmul.f32 %v3546_v32, %v3518_v31 }
 0x9bd   : > { %v3619_v37 = vpack.c.bf16 %v3551_v34, %v3551_v34 }
 0x9be   : > { %3844 = vmatprep.mubr.bf16.mxu0 %v3617_v35  ;;  %v3618_v38 = vpack.c.bf16 %v3550_v36, %v3550_v36 }
 0x9bf   : > { %3884 = vmatprep.mubr.bf16.mxu1 %v3619_v37  ;;  %3845 = vmatmul.mubr.bf16.vlgmr.msra.gmra.mrb[52].mxu0 %v3616_v33 }
 0x9c0   : > { %3885 = vmatmul.mubr.bf16.vlgmr.msra.gmra.mrb[52].mxu1 %v3618_v38  ;;  %5088 = vmatpush3.bf16.msra.mxu0 (!%p4528_p1), %v5406_v54 }
 0x9c1   : > { %5089 = vmatprep.subr.bf16.mxu0 (!%p4528_p1), %v5517_v55  ;;  %5103 = vmatprep.mubr.msk.bf16.mxu0 (!%p4528_p1), %vm5518_vm5, %v5517_v55 }
 0x9c4   : > { %5090 = vmatpush3.bf16.msra.mxu0 (!%p4528_p1), %v5407_v56 }
 0x9c5   : > { %5091 = vmatprep.subr.bf16.mxu0 (!%p4528_p1), %v5517_v55 }
 0x9c8   : > { %5092 = vmatpush3.bf16.msra.mxu0 (!%p4528_p1), %v5408_v60 }
 0x9c9   : > { %5093 = vmatprep.subr.bf16.mxu0 (!%p4528_p1), %v5517_v55 }
 0x9cc   : > { %5094 = vmatpush3.bf16.msra.mxu0 (!%p4528_p1), %v5409_v61 }
 0x9cd   : > { %5095 = vmatprep.subr.bf16.mxu0 (!%p4528_p1), %v5517_v55 }
 0x9d0   : > { %5096 = vmatpush3.bf16.msra.mxu0 (!%p4528_p1), %v5410_v62 }
 0x9d1   : > { %5097 = vmatprep.subr.bf16.mxu0 (!%p4528_p1), %v5517_v55 }
 0x9d4   : > { %5098 = vmatpush3.bf16.msra.mxu0 (!%p4528_p1), %v5411_v63 }
 0x9d5   : > { %5099 = vmatprep.subr.bf16.mxu0 (!%p4528_p1), %v5517_v55 }
 0x9d8   : > { %5100 = vmatpush3.bf16.msra.mxu0 (!%p4528_p1), %v5412_v0 }
 0x9d9   : > { %5101 = vmatprep.subr.bf16.mxu0 (!%p4528_p1), %v5517_v55 }
 0x9dc   : > { %5102 = vmatpush3.bf16.msra.mxu0 (!%p4528_p1), %v5413_v1 }
 0xa92   : > { %v4710_v39 = vpop.f32.mrb[52].mxu0 }
 0xa93   : > { %v4732_v40 = vpop.f32.mrb[52].mxu1  ;;  %v4711_v41 = vpop.f32.mrb[53].mxu0 }
 0xa94   : > { %v4712_v42 = vadd.f32 %v4711_v41, %v4710_v39  ;;  %v4733_v43 = vpop.f32.mrb[53].mxu1  ;;  %v4713_v44 = vpop.f32.mrb[54].mxu0 }
 0xa95   : > { %v4734_v45 = vadd.f32 %v4733_v43, %v4732_v40  ;;  %v4735_v46 = vpop.f32.mrb[54].mxu1  ;;  %v4714_v47 = vpop.f32.mrb[55].mxu0 }
 0xa96   : > { %v4736_v48 = vpop.f32.mrb[55].mxu1 }
 0xa97   : > { %v3887_v49 = vadd.f32 %v4734_v45, %v4712_v42  ;;  %3905 = sbr.rel (%p4528_p1) target bundleno = 3245 (0xcad), region = 124 }
 0xa99   : > { %v3892_v51 = vadd.f32 %v3887_v49, %v6186_v21 }
 0xa9b   : > { %v3900_v53 = vadd.f32 %v4527_v50, %v3892_v51 }
 0xa9d   : > { %3901 = vst [vmem:[#allocation2] sm:$0xff] %v3900_v53  ;;  %3908 = vadd.xlane.f32.xlu0 (!%p4528_p1), %v3900_v53 }
 0xb2a   : > { %v3909_v21 = vpop.xlane.xlu0 %3908 }
 0xb2b   : > { %v3910_v57 = vmul.f32 0.0078125, %v3909_v21 }
 0xb2d   : > { %v3911_v58 = vsub.f32 %v3900_v53, %v3910_v57 }
 0xb2f   : > { %v3912_v59 = vmul.f32 %v3911_v58, %v3911_v58 }
 0xb31   : > { %3913 = vadd.xlane.f32.xlu0 %v3912_v59 }
 0xbbe   : > { %v3914_v2 = vpop.xlane.xlu0 %3913 }
 0xbbf   : > { %v3915_v3 = vmul.f32 0.0078125, %v3914_v2 }
 0xbc1   : > { %v3916_v4 = vadd.f32 1e-05, %v3915_v3 }
 0xbc3   : > { %5414 = vrsqrt.f32 %v3916_v4 }
 0xbcd   : > { %v5415_v22 = vpop.eup %5414 }
 0xbce   : > { %v3918_v6 = vmul.f32 %v5415_v22, %v3911_v58 }
 0xbd0   : > { %v3925_v8 = vmul.f32 %v4529_v5, %v3918_v6 }
 0xbd2   : > { %v3932_v9 = vadd.f32 %v4530_v7, %v3925_v8 }
 0xbd4   : > { %v3949_v10 = vpack.c.bf16 %v3932_v9, %v3932_v9 }
 0xbd6   : > { %5104 = vmatmul.mubr.bf16.vlgmr.msra.gmra.mrb[0].mxu0 %v3949_v10 }
 0xca9   : > { %v4032_v11 = vpop.f32.mrb[0].mxu0 }
 0xcaa   : > { %4038 = vst [vmem:[%s948_s11] sm:$0xff] %v4032_v11  ;;  %v5105_v12 = vpop.f32.mrb[1].mxu0 }
 0xcab   : > { %v4035_v13 = vpop.f32.mrb[2].mxu0 }
 0xcac   : > { %v5106_v14 = vpop.f32.mrb[3].mxu0 }
 0xcad PF: > { %s6479_s13 = sld [smem:[#allocation10_spill]]  ;;  %s6480_s4 = sld [smem:[#allocation7_spill]] }
 0xcae   : > { %s6482_s5 = sld [smem:[#allocation41_spill]]  ;;  %s4053_s24 = sshll.u32 %s948_s11, 4  ;;  %s4054_s24 = int_to_ptr.vmem [resolvable:$true] %s4053_s24 }
 0xcaf   : > { %s5416_s3 = scalar_lea.vmem %s4054_s24, 128  ;;  %s5519_s7 = smov [#allocation3]  }
 0xcb0   : > { %p5417_p2 = scmp.ne.s32.totalorder %s4054_s24, %s5416_s3  ;;  %s5420_s20 = sshll.u32 %s5519_s7, 4  ;;  %s5421_s20 = int_to_ptr.vmem [resolvable:$false] %s5420_s20 }
 0xcb1   : > { %s5422_s23 = scalar_lea.vmem %s5421_s20, 256  ;;  %p5423_p6 = scmp.lt.s32.totalorder %s4054_s24, %s5421_s20 }
 0xcb2   : > { %p5418_p4 = pnand %p5417_p2, %p5694_p3  ;;  %p5424_p7 = scmp.lt.s32.totalorder %s5422_s23, %s5416_s3 }
 0xcb3   : > { %s4540_s0 = sshll.u32 %s6479_s13, 7  ;;  %s6484_s8 = sand.u32 1, %s6480_s4  }
 0xcb4   : > { %s6483_s19 = smov %s6482_s5  ;;  %s6312_s6 = scalar_lea.hbm %s6482_s5, %s4540_s0 }
 0xcb5   : > { %s4040_s10 = scalar_lea.sflag [#allocation4], %s6484_s8  ;;  %p5419_p5 = pneg %p5418_p4 }
 0xcb6   : > { %p5425_p8 = por %p5424_p7, %p5423_p6 }
 0xcb8   : > { %p5426_p10 = pnand %p5425_p8, %p5419_p5 }
 0xcba   : > { %5429 = shalt.err (!%p5426_p10)
}
 0xcbb   : > { %s5430_s2 = scalar_lea.hbm %s6312_s6, 128  ;;  %s5434_s25 = scalar_lea.hbm %s6483_s19, 256 }
 0xcbc   : > { %p5431_p11 = scmp.ne.s32.totalorder %s6312_s6, %s5430_s2  ;;  %p5435_p0 = scmp.lt.u32.totalorder %s6312_s6, %s6483_s19 }
 0xcbd   : > { %p5436_p1 = scmp.lt.u32.totalorder %s5434_s25, %s5430_s2  ;;  %p5438_p4 = scmp.lt.u32.totalorder %s5430_s2, %s6312_s6 }
 0xcbe   : > { %p5432_p12 = pnand %p5431_p11, %p5694_p3 }
 0xcbf   : > { %p5437_p2 = por %p5436_p1, %p5435_p0 }
 0xcc0   : > { %p5433_p13 = pneg %p5432_p12 }
 0xcc1   : > { %p5439_p5 = por %p5438_p4, %p5437_p2 }
 0xcc3   : > { %p5440_p6 = pnand %p5439_p5, %p5433_p13 }
 0xcc5   : > { %5443 = shalt.err (!%p5440_p6)
}
 0xcc6   : > { %5107 = dma.vmem_to_hbm [thread:$0]  (%p5694_p3), %s4054_s24, 128, %s6312_s6, %s4040_s10  }
 0xcc7 PF: > { %s6485_s26 = sld [smem:[#allocation13_spill]]  ;;  %s6486_s27 = sld [smem:[#allocation6_spill]] }
 0xccd   : > { %p5113_p7 = scmp.ge.s32.totalorder %s6485_s26, 2  ;;  %s4065_s13 = sand.u32 1, %s6486_s27  }
 0xcce   : > { %s4066_s4 = scalar_lea.sflag [#allocation4], %s4065_s13 }
 0xccf   : > { %p5110_p8 = pnand %p5113_p7, %p5704_p9 }
 0xcd1   : > { %5477 = dma.done.wait (!%p5110_p8), %s4066_s4, 128  }
 0xcd2   : > { %5479 = vsyncadd (!%p5110_p8), %s4066_s4, 4294967168  ;;  %s37_s0 = sadd.s32 1, %s6485_s26   ;;  %s6488_s5 = sld [smem:[#allocation7_spill]] }
 0xcd3   : > { %p34_p10 = scmp.ge.s32.totalorder %s37_s0, 6   ;;  %s6489_s26 = sld [smem:[#allocation8_spill]] }
 0xcd4   : > { %s6490_s27 = sld [smem:[#allocation18_spill]]  ;;  %s6491_s28 = sld [smem:[#allocation11_spill]] }
 0xcd5   : > { %s6492_s6 = sld [smem:[#allocation12_spill]]  ;;  %s6493_s2 = sld [smem:[#allocation14_spill]] }
 0xcd6   : > { %s6494_s29 = sld [smem:[#allocation16_spill]]  ;;  %36 = sbr.rel (!%p34_p10) target bundleno = 27 (0x1b), region = 207 }
 0xcdd   :  { %4071 = vsyncpa [#allocation4], 1 }
 0xcde   :  { %4073 = vsyncpa [#allocation4 + $0x1], 1 }

</bundles_post_ra>
